<compile_context>
chip_gen: v7x
topology: tpu7x:2x2x1
jax: 0.10.0
libtpu: 0.0.40
codegen_flags: <defaults>
</compile_context>

<pallas_src>
import jax
import jax.numpy as jnp
from jax.experimental import pallas as pl
from jax.experimental.pallas import tpu as pltpu

NEG_SLOPE = 0.1            # LeakyReLU slope used by HiFiGAN-style generators
NUM_MELS = 16
HIDDEN = 32
UPS_RATES = (4, 4)         # hop_size = 4 * 4 = 16
HOP = 16

# Channel / phase bookkeeping for the fixed demo architecture.
_C0 = HIDDEN // 2                         # 16 channels after stage 0
_C1 = HIDDEN // 4                         # 8  channels after stage 1
_P0 = UPS_RATES[0]                        # 4  accumulated phases after stage 0
_P1 = UPS_RATES[0] * UPS_RATES[1]         # 16 accumulated phases after stage 1


def _leaky(x):
    return jnp.maximum(x, NEG_SLOPE * x)


# ---------------------------------------------------------------------------
# In-kernel building blocks (operate on VMEM-resident values, never touch HBM)
# ---------------------------------------------------------------------------
def _shift_lanes(x, delta):
    """x[:, t] -> x[:, t + delta], zero-filled outside [0, T)."""
    rows, T = x.shape
    if delta == 0:
        return x
    if delta > 0:
        return jnp.concatenate([x[:, delta:], jnp.zeros((rows, delta), x.dtype)], axis=1)
    e = -delta
    return jnp.concatenate([jnp.zeros((rows, e), x.dtype), x[:, :T - e]], axis=1)


def _tap_folded(a, d, C, P):
    """Tap d of a 'same' conv on the *interleaved* signal, in folded layout.

    a[p*C + c, t] = signal[c, P*t + p]  ->  S[p*C + c, t] = signal[c, P*t + p + d]
    (zero outside the signal).  Requires |d| < P.  Row slices are sublane-aligned
    (offsets are multiples of C >= 8); only the |d|*C wrapped rows need a 1-lane
    shift, so no O(T^2) construct and no per-step iota/select.
    """
    R, _ = a.shape
    if d == 0:
        return a
    if d > 0:
        main = a[d * C:, :]                    # phases p <  P-d : same mel frame
        wrap = _shift_lanes(a[:d * C, :], 1)   # phases p >= P-d : next mel frame
        return jnp.concatenate([main, wrap], axis=0)
    e = -d
    wrap = _shift_lanes(a[R - e * C:, :], -1)  # phases p <  e   : previous mel frame
    main = a[:R - e * C, :]                    # phases p >= e   : same mel frame
    return jnp.concatenate([wrap, main], axis=0)


def _conv_folded(a, w, b, *, K, C, P, pre_leaky):
    """'same' Conv1d on the interleaved signal, folded layout, one MXU matmul.

    a: (P*C, T) f32, w: (P*Cout, K*P*C) bf16 (block-diagonal per phase),
    b: (P*Cout, 1) f32  ->  (P*Cout, T) f32.
    """
    h = _leaky(a) if pre_leaky else a
    h = h.astype(jnp.bfloat16)                 # cast BEFORE building the tap stack
    pad = (K - 1) // 2
    if P == 1:
        taps = [_shift_lanes(h, k - pad) for k in range(K)]
    else:
        taps = [_tap_folded(h, k - pad, C, P) for k in range(K)]
    stack = jnp.concatenate(taps, axis=0)      # (K*P*C, T)
    return jnp.dot(w, stack, preferred_element_type=jnp.float32) + b


def _upsample_folded(a, w, b):
    """lrelu -> ConvTranspose1d(kernel==stride) in folded layout: ONE matmul.
    The time interleave is encoded purely in the weight's row ordering.

    a: (P*Cin, T) f32, w: (P*K*Cout, P*Cin) bf16, b: (P*K*Cout, 1) f32
    -> (P*K*Cout, T) f32, row (p*K + k)*Cout + co holds audio phase p*K + k.
    """
    h = _leaky(a).astype(jnp.bfloat16)
    return jnp.dot(w, h, preferred_element_type=jnp.float32) + b


# ---------------------------------------------------------------------------
# Fused generator kernel: whole network for one batch element per grid step.
# ---------------------------------------------------------------------------
def _firefly_fused_kernel(mel_ref,
                          pre_w, pre_b,
                          up0_w, up0_b, res0_w, res0_b,
                          up1_w, up1_b, res1_w, res1_b,
                          post_w, post_b,
                          out_ref):
    # conv_pre: Conv1d(num_mels -> hidden, k=7, 'same')
    x = mel_ref[0]                                               # (num_mels, T) f32
    x = _conv_folded(x, pre_w[...], pre_b[...], K=7, C=NUM_MELS, P=1, pre_leaky=False)

    # stage 0: lrelu -> ConvTranspose1d(stride=4) -> ResBlock: x + conv3(lrelu(x))
    x = _upsample_folded(x, up0_w[...], up0_b[...])              # (4*16, T)
    x = x + _conv_folded(x, res0_w[...], res0_b[...], K=3, C=_C0, P=_P0, pre_leaky=True)

    # stage 1
    x = _upsample_folded(x, up1_w[...], up1_b[...])              # (16*8, T)
    x = x + _conv_folded(x, res1_w[...], res1_b[...], K=3, C=_C1, P=_P1, pre_leaky=True)

    # conv_post (Cout=1, k=7) + tanh.  In the folded layout this is a (hop, 7*P*C)
    # block-diagonal matmul; output row p, lane t is audio sample hop*t + p.
    y = _conv_folded(x, post_w[...], post_b[...], K=7, C=_C1, P=_P1, pre_leaky=True)
    out_ref[0] = jnp.tanh(y)                                     # (hop, T) phase-major


# ---------------------------------------------------------------------------
# Wrapper
# ---------------------------------------------------------------------------
def _vmem_limit_bytes():
    # ~3/4 of the chip's VMEM, capped at 100 MiB: ~48 MiB on v7x (64 MiB VMEM),
    # ~96 MiB on v5e/v6e (128 MiB VMEM).
    try:
        cap = int(pltpu.get_tpu_info().vmem_capacity_bytes)
    except Exception:
        cap = 64 * 1024 * 1024
    return min(cap * 3 // 4, 100 * 1024 * 1024)


@jax.jit
def firefly_forward(params, mel):
    """mel: (B, T, num_mels) f32 -> audio: (B, 1, T * hop_size) f32."""
    B, T, num_mels = mel.shape

    # Reference does `c = mel.transpose(1, 2)`; the mel is hop_size x smaller than
    # the audio, so this one input-side XLA transpose is negligible.
    x = jnp.transpose(mel, (0, 2, 1))                            # (B, num_mels, T)

    names = ("pre_w", "pre_b", "up0_w", "up0_b", "res0_w", "res0_b",
             "up1_w", "up1_b", "res1_w", "res1_b", "post_w", "post_b")
    weights = [params[n] for n in names]

    in_specs = [pl.BlockSpec((1, num_mels, T), lambda b: (b, 0, 0))]
    in_specs += [pl.BlockSpec(w.shape, lambda b: (0, 0)) for w in weights]

    # TODO(synk): for very long sequences add a halo'd time-tile grid axis
    # (whole-net receptive field is only 6 mel frames per side) marked "parallel"
    # so a B==1 call also splits across both v7x TensorCores; with the O(T^2)
    # interleave gone the per-sequence working set is linear in T and fits VMEM
    # at demo / typical clip lengths, so the grid is batch-only here.
    out = pl.pallas_call(
        _firefly_fused_kernel,
        out_shape=jax.ShapeDtypeStruct((B, HOP, T), jnp.float32),
        grid=(B,),
        in_specs=in_specs,
        out_specs=pl.BlockSpec((1, HOP, T), lambda b: (b, 0, 0)),
        compiler_params=pltpu.CompilerParams(
            dimension_semantics=("parallel",),
            vmem_limit_bytes=_vmem_limit_bytes()),
    )(x, *weights)

    # Kernel output is phase-major (lane-dense stores over T); one cheap XLA
    # transpose of the final audio produces the interleaved waveform.
    return jnp.transpose(out, (0, 2, 1)).reshape(B, 1, HOP * T)


# ---------------------------------------------------------------------------
# Parameters: PyTorch-native layouts + one-time prep into folded kernel layouts
# ---------------------------------------------------------------------------
def init_params(key, num_mels=NUM_MELS, hidden=HIDDEN, ups=UPS_RATES):
    """Synthetic weights in PyTorch layouts: Conv1d (Cout, Cin, K), ConvT1d (Cin, Cout, K)."""
    keys = iter(jax.random.split(key, 16))

    def nrm(shape, scale=0.1):
        return scale * jax.random.normal(next(keys), shape, jnp.float32)

    p = {"pre_w": nrm((hidden, num_mels, 7)), "pre_b": nrm((hidden,))}
    ch = hidden
    for i, s in enumerate(ups):
        co = ch // 2
        p[f"up{i}_w"] = nrm((ch, co, s))        # ConvTranspose1d: (Cin, Cout, K=stride)
        p[f"up{i}_b"] = nrm((co,))
        p[f"res{i}_w"] = nrm((co, co, 3))       # Conv1d: (Cout, Cin, K)
        p[f"res{i}_b"] = nrm((co,))
        ch = co
    p["post_w"] = nrm((1, ch, 7))
    p["post_b"] = nrm((1,))
    return p


def _fold_conv_weight(w, P):
    """Conv1d (Cout, Cin, K) -> (P*Cout, K*P*Cin) bf16,
    W[p*Cout+co, k*P*Cin + q*Cin + ci] = w[co, ci, k] * (p == q)."""
    Cout, Cin, K = w.shape
    wt = jnp.transpose(w, (0, 2, 1))                      # (Cout, K, Cin)
    eye = jnp.eye(P, dtype=jnp.float32)
    full = jnp.einsum("pq,okc->pokqc", eye, wt)           # (P, Cout, K, P, Cin)
    return full.reshape(P * Cout, K * P * Cin).astype(jnp.bfloat16)


def _fold_convT_weight(w, P):
    """ConvTranspose1d (Cin, Cout, K), kernel==stride -> (P*K*Cout, P*Cin) bf16,
    W[(p*K+k)*Cout+co, q*Cin+ci] = w[ci, co, k] * (p == q).
    The row ordering realizes the time interleave for free."""
    Cin, Cout, K = w.shape
    wt = jnp.transpose(w, (2, 1, 0))                      # (K, Cout, Cin)
    eye = jnp.eye(P, dtype=jnp.float32)
    full = jnp.einsum("pq,koc->pkoqc", eye, wt)           # (P, K, Cout, P, Cin)
    return full.reshape(P * K * Cout, P * Cin).astype(jnp.bfloat16)


def _fold_bias(b, P):
    """(Cout,) -> (P*Cout, 1) f32, bias replicated over the P phases."""
    return jnp.tile(b.reshape(1, -1), (P, 1)).reshape(-1, 1).astype(jnp.float32)


def prepare_params(p, ups=UPS_RATES):
    """One-time host-side prep into phase-folded, MXU-ready (bf16) layouts."""
    q = {"pre_w": _fold_conv_weight(p["pre_w"], 1), "pre_b": _fold_bias(p["pre_b"], 1)}
    P = 1
    for i, s in enumerate(ups):
        q[f"up{i}_w"] = _fold_convT_weight(p[f"up{i}_w"], P)
        q[f"up{i}_b"] = _fold_bias(p[f"up{i}_b"], P * s)
        P *= s
        q[f"res{i}_w"] = _fold_conv_weight(p[f"res{i}_w"], P)
        q[f"res{i}_b"] = _fold_bias(p[f"res{i}_b"], P)
    q["post_w"] = _fold_conv_weight(p["post_w"], P)
    q["post_b"] = _fold_bias(p["post_b"], P)
    return q


# ---------------------------------------------------------------------------
# Plain-XLA reference (same representative net, same bf16 matmul operands)
# ---------------------------------------------------------------------------
def _ref_conv1d(x, w, b, pad):
    K = w.shape[-1]
    t_out = x.shape[-1]                                  # pad == (K-1)//2 -> 'same'
    xp = jnp.pad(x, ((0, 0), (0, 0), (pad, pad))).astype(jnp.bfloat16)
    wb = w.astype(jnp.bfloat16)
    acc = jnp.zeros((x.shape[0], w.shape[0], t_out), jnp.float32) + b[None, :, None]
    for k in range(K):
        acc = acc + jnp.einsum("oi,bit->bot", wb[:, :, k], xp[:, :, k:k + t_out],
                               preferred_element_type=jnp.float32)
    return acc


def _ref_convT(x, w, b, stride):
    B, Cin, T = x.shape
    Cout, K = w.shape[1], w.shape[2]
    y = jnp.einsum("iok,bit->botk", w.astype(jnp.bfloat16), x.astype(jnp.bfloat16),
                   preferred_element_type=jnp.float32)
    return y.reshape(B, Cout, T * K) + b[None, :, None]


def _ref_forward(raw_params, mel):
    h = jnp.transpose(mel, (0, 2, 1))
    h = _ref_conv1d(h, raw_params["pre_w"], raw_params["pre_b"], pad=3)
    for i, s in enumerate(UPS_RATES):
        h = _ref_convT(_leaky(h), raw_params[f"up{i}_w"], raw_params[f"up{i}_b"], stride=s)
        h = h + _ref_conv1d(_leaky(h), raw_params[f"res{i}_w"], raw_params[f"res{i}_b"], pad=1)
    h = _ref_conv1d(_leaky(h), raw_params["post_w"], raw_params["post_b"], pad=3)
    return jnp.tanh(h)


if __name__ == "__main__":
    key = jax.random.PRNGKey(0)
    k_param, k_mel = jax.random.split(key)

    B, T = 2, 8
    mel = jax.random.normal(k_mel, (B, T, NUM_MELS), jnp.float32)

    raw_params = init_params(k_param)
    params = prepare_params(raw_params)          # folded block-diagonal bf16 MXU layouts

    audio = firefly_forward(params, mel)
    jax.block_until_ready(audio)

    assert audio.shape == (B, 1, T * HOP), audio.shape
    assert bool(jnp.all(jnp.isfinite(audio)))

    # Cross-check the fused kernel against a plain-XLA reference of the same
    # representative generator (same bf16 matmul operands, f32 accumulation).
    # Any interleave / phase off-by-one would show up as O(1) sample errors.
    ref = _ref_forward(raw_params, mel)
    err = float(jnp.max(jnp.abs(audio - ref)))
    assert err < 2e-2, f"max abs diff vs reference: {err}"

    print("KERNEL_OK")
</pallas_src>

<mosaic_0001>
module attributes {stable_mosaic.version = 11 : i64} {
  func.func @_firefly_fused_kernel(%arg0: i32, %arg1: memref<1x16x8xf32, #tpu.memory_space<vmem>>, %arg2: memref<32x112xbf16, #tpu.memory_space<vmem>>, %arg3: memref<32x1xf32, #tpu.memory_space<vmem>>, %arg4: memref<64x32xbf16, #tpu.memory_space<vmem>>, %arg5: memref<64x1xf32, #tpu.memory_space<vmem>>, %arg6: memref<64x192xbf16, #tpu.memory_space<vmem>>, %arg7: memref<64x1xf32, #tpu.memory_space<vmem>>, %arg8: memref<128x64xbf16, #tpu.memory_space<vmem>>, %arg9: memref<128x1xf32, #tpu.memory_space<vmem>>, %arg10: memref<128x384xbf16, #tpu.memory_space<vmem>>, %arg11: memref<128x1xf32, #tpu.memory_space<vmem>>, %arg12: memref<16x896xbf16, #tpu.memory_space<vmem>>, %arg13: memref<16x1xf32, #tpu.memory_space<vmem>>, %arg14: memref<1x16x8xf32, #tpu.memory_space<vmem>>) attributes {dimension_semantics = [#tpu.dimension_semantics<parallel>], iteration_bounds = array<i64: 2>, scalar_prefetch = 0 : i64, scratch_operands = 0 : i64, tpu.core_type = #tpu.core_type<tc>, window_params = [{transform_indices = @transform_0, window_bounds = array<i64: 1, 16, 8>}, {pipeline_mode = #tpu.pipeline_mode<synchronous>, transform_indices = @transform_1, window_bounds = array<i64: 32, 112>}, {pipeline_mode = #tpu.pipeline_mode<synchronous>, transform_indices = @transform_2, window_bounds = array<i64: 32, 1>}, {pipeline_mode = #tpu.pipeline_mode<synchronous>, transform_indices = @transform_3, window_bounds = array<i64: 64, 32>}, {pipeline_mode = #tpu.pipeline_mode<synchronous>, transform_indices = @transform_4, window_bounds = array<i64: 64, 1>}, {pipeline_mode = #tpu.pipeline_mode<synchronous>, transform_indices = @transform_5, window_bounds = array<i64: 64, 192>}, {pipeline_mode = #tpu.pipeline_mode<synchronous>, transform_indices = @transform_6, window_bounds = array<i64: 64, 1>}, {pipeline_mode = #tpu.pipeline_mode<synchronous>, transform_indices = @transform_7, window_bounds = array<i64: 128, 64>}, {pipeline_mode = #tpu.pipeline_mode<synchronous>, transform_indices = @transform_8, window_bounds = array<i64: 128, 1>}, {pipeline_mode = #tpu.pipeline_mode<synchronous>, transform_indices = @transform_9, window_bounds = array<i64: 128, 384>}, {pipeline_mode = #tpu.pipeline_mode<synchronous>, transform_indices = @transform_10, window_bounds = array<i64: 128, 1>}, {pipeline_mode = #tpu.pipeline_mode<synchronous>, transform_indices = @transform_11, window_bounds = array<i64: 16, 896>}, {pipeline_mode = #tpu.pipeline_mode<synchronous>, transform_indices = @transform_12, window_bounds = array<i64: 16, 1>}, {transform_indices = @transform_13, window_bounds = array<i64: 1, 16, 8>}]} {
    %c0 = arith.constant 0 : index
    %c0_0 = arith.constant 0 : index
    %c0_1 = arith.constant 0 : index
    %0 = vector.load %arg1[%c0, %c0_0, %c0_1] : memref<1x16x8xf32, #tpu.memory_space<vmem>>, vector<1x16x8xf32>
    %1 = vector.shape_cast %0 : vector<1x16x8xf32> to vector<16x8xf32>
    %c0_2 = arith.constant 0 : index
    %c0_3 = arith.constant 0 : index
    %2 = vector.load %arg2[%c0_2, %c0_3] : memref<32x112xbf16, #tpu.memory_space<vmem>>, vector<32x112xbf16>
    %c0_4 = arith.constant 0 : index
    %c0_5 = arith.constant 0 : index
    %3 = vector.load %arg3[%c0_4, %c0_5] : memref<32x1xf32, #tpu.memory_space<vmem>>, vector<32x1xf32>
    %4 = arith.truncf %1 : vector<16x8xf32> to vector<16x8xbf16>
    %cst = arith.constant 0.000000e+00 : bf16
    %5 = vector.broadcast %cst : bf16 to vector<16x3xbf16>
    %6 = vector.extract_strided_slice %4 {offsets = [0, 0], sizes = [16, 5], strides = [1, 1]} : vector<16x8xbf16> to vector<16x5xbf16>
    %7 = tpu.concatenate %5, %6 in 1 : vector<16x3xbf16>, vector<16x5xbf16> -> vector<16x8xbf16>
    %cst_6 = arith.constant 0.000000e+00 : bf16
    %8 = vector.broadcast %cst_6 : bf16 to vector<16x2xbf16>
    %9 = vector.extract_strided_slice %4 {offsets = [0, 0], sizes = [16, 6], strides = [1, 1]} : vector<16x8xbf16> to vector<16x6xbf16>
    %10 = tpu.concatenate %8, %9 in 1 : vector<16x2xbf16>, vector<16x6xbf16> -> vector<16x8xbf16>
    %cst_7 = arith.constant 0.000000e+00 : bf16
    %11 = vector.broadcast %cst_7 : bf16 to vector<16x1xbf16>
    %12 = vector.extract_strided_slice %4 {offsets = [0, 0], sizes = [16, 7], strides = [1, 1]} : vector<16x8xbf16> to vector<16x7xbf16>
    %13 = tpu.concatenate %11, %12 in 1 : vector<16x1xbf16>, vector<16x7xbf16> -> vector<16x8xbf16>
    %14 = vector.extract_strided_slice %4 {offsets = [0, 1], sizes = [16, 7], strides = [1, 1]} : vector<16x8xbf16> to vector<16x7xbf16>
    %cst_8 = arith.constant 0.000000e+00 : bf16
    %15 = vector.broadcast %cst_8 : bf16 to vector<16x1xbf16>
    %16 = tpu.concatenate %14, %15 in 1 : vector<16x7xbf16>, vector<16x1xbf16> -> vector<16x8xbf16>
    %17 = vector.extract_strided_slice %4 {offsets = [0, 2], sizes = [16, 6], strides = [1, 1]} : vector<16x8xbf16> to vector<16x6xbf16>
    %cst_9 = arith.constant 0.000000e+00 : bf16
    %18 = vector.broadcast %cst_9 : bf16 to vector<16x2xbf16>
    %19 = tpu.concatenate %17, %18 in 1 : vector<16x6xbf16>, vector<16x2xbf16> -> vector<16x8xbf16>
    %20 = vector.extract_strided_slice %4 {offsets = [0, 3], sizes = [16, 5], strides = [1, 1]} : vector<16x8xbf16> to vector<16x5xbf16>
    %cst_10 = arith.constant 0.000000e+00 : bf16
    %21 = vector.broadcast %cst_10 : bf16 to vector<16x3xbf16>
    %22 = tpu.concatenate %20, %21 in 1 : vector<16x5xbf16>, vector<16x3xbf16> -> vector<16x8xbf16>
    %23 = tpu.concatenate %7, %10, %13, %4, %16, %19, %22 in 0 : vector<16x8xbf16>, vector<16x8xbf16>, vector<16x8xbf16>, vector<16x8xbf16>, vector<16x8xbf16>, vector<16x8xbf16>, vector<16x8xbf16> -> vector<112x8xbf16>
    %cst_11 = arith.constant dense<0.000000e+00> : vector<32x8xf32>
    %24 = tpu.matmul %2, %23, %cst_11 {dimension_numbers = #tpu.dot_dimension_numbers<[1], [0], [0], [1], [0, 0, 1, 1], [], []>} : vector<32x112xbf16>, vector<112x8xbf16>, vector<32x8xf32> -> vector<32x8xf32>
    %25 = vector.broadcast %3 : vector<32x1xf32> to vector<32x8xf32>
    %26 = arith.addf %24, %25 : vector<32x8xf32>
    %c0_12 = arith.constant 0 : index
    %c0_13 = arith.constant 0 : index
    %27 = vector.load %arg4[%c0_12, %c0_13] : memref<64x32xbf16, #tpu.memory_space<vmem>>, vector<64x32xbf16>
    %c0_14 = arith.constant 0 : index
    %c0_15 = arith.constant 0 : index
    %28 = vector.load %arg5[%c0_14, %c0_15] : memref<64x1xf32, #tpu.memory_space<vmem>>, vector<64x1xf32>
    %cst_16 = arith.constant 1.000000e-01 : f32
    %29 = vector.broadcast %cst_16 : f32 to vector<32x8xf32>
    %30 = arith.mulf %29, %26 : vector<32x8xf32>
    %31 = arith.maximumf %26, %30 : vector<32x8xf32>
    %32 = arith.truncf %31 : vector<32x8xf32> to vector<32x8xbf16>
    %cst_17 = arith.constant dense<0.000000e+00> : vector<64x8xf32>
    %33 = tpu.matmul %27, %32, %cst_17 {dimension_numbers = #tpu.dot_dimension_numbers<[1], [0], [0], [1], [0, 0, 1, 1], [], []>} : vector<64x32xbf16>, vector<32x8xbf16>, vector<64x8xf32> -> vector<64x8xf32>
    %34 = vector.broadcast %28 : vector<64x1xf32> to vector<64x8xf32>
    %35 = arith.addf %33, %34 : vector<64x8xf32>
    %c0_18 = arith.constant 0 : index
    %c0_19 = arith.constant 0 : index
    %36 = vector.load %arg6[%c0_18, %c0_19] : memref<64x192xbf16, #tpu.memory_space<vmem>>, vector<64x192xbf16>
    %c0_20 = arith.constant 0 : index
    %c0_21 = arith.constant 0 : index
    %37 = vector.load %arg7[%c0_20, %c0_21] : memref<64x1xf32, #tpu.memory_space<vmem>>, vector<64x1xf32>
    %cst_22 = arith.constant 1.000000e-01 : f32
    %38 = vector.broadcast %cst_22 : f32 to vector<64x8xf32>
    %39 = arith.mulf %38, %35 : vector<64x8xf32>
    %40 = arith.maximumf %35, %39 : vector<64x8xf32>
    %41 = arith.truncf %40 : vector<64x8xf32> to vector<64x8xbf16>
    %42 = vector.extract_strided_slice %41 {offsets = [48, 0], sizes = [16, 8], strides = [1, 1]} : vector<64x8xbf16> to vector<16x8xbf16>
    %cst_23 = arith.constant 0.000000e+00 : bf16
    %43 = vector.broadcast %cst_23 : bf16 to vector<16x1xbf16>
    %44 = vector.extract_strided_slice %42 {offsets = [0, 0], sizes = [16, 7], strides = [1, 1]} : vector<16x8xbf16> to vector<16x7xbf16>
    %45 = tpu.concatenate %43, %44 in 1 : vector<16x1xbf16>, vector<16x7xbf16> -> vector<16x8xbf16>
    %46 = vector.extract_strided_slice %41 {offsets = [0, 0], sizes = [48, 8], strides = [1, 1]} : vector<64x8xbf16> to vector<48x8xbf16>
    %47 = tpu.concatenate %45, %46 in 0 : vector<16x8xbf16>, vector<48x8xbf16> -> vector<64x8xbf16>
    %48 = vector.extract_strided_slice %41 {offsets = [16, 0], sizes = [48, 8], strides = [1, 1]} : vector<64x8xbf16> to vector<48x8xbf16>
    %49 = vector.extract_strided_slice %41 {offsets = [0, 0], sizes = [16, 8], strides = [1, 1]} : vector<64x8xbf16> to vector<16x8xbf16>
    %50 = vector.extract_strided_slice %49 {offsets = [0, 1], sizes = [16, 7], strides = [1, 1]} : vector<16x8xbf16> to vector<16x7xbf16>
    %cst_24 = arith.constant 0.000000e+00 : bf16
    %51 = vector.broadcast %cst_24 : bf16 to vector<16x1xbf16>
    %52 = tpu.concatenate %50, %51 in 1 : vector<16x7xbf16>, vector<16x1xbf16> -> vector<16x8xbf16>
    %53 = tpu.concatenate %48, %52 in 0 : vector<48x8xbf16>, vector<16x8xbf16> -> vector<64x8xbf16>
    %54 = tpu.concatenate %47, %41, %53 in 0 : vector<64x8xbf16>, vector<64x8xbf16>, vector<64x8xbf16> -> vector<192x8xbf16>
    %cst_25 = arith.constant dense<0.000000e+00> : vector<64x8xf32>
    %55 = tpu.matmul %36, %54, %cst_25 {dimension_numbers = #tpu.dot_dimension_numbers<[1], [0], [0], [1], [0, 0, 1, 1], [], []>} : vector<64x192xbf16>, vector<192x8xbf16>, vector<64x8xf32> -> vector<64x8xf32>
    %56 = vector.broadcast %37 : vector<64x1xf32> to vector<64x8xf32>
    %57 = arith.addf %55, %56 : vector<64x8xf32>
    %58 = arith.addf %35, %57 : vector<64x8xf32>
    %c0_26 = arith.constant 0 : index
    %c0_27 = arith.constant 0 : index
    %59 = vector.load %arg8[%c0_26, %c0_27] : memref<128x64xbf16, #tpu.memory_space<vmem>>, vector<128x64xbf16>
    %c0_28 = arith.constant 0 : index
    %c0_29 = arith.constant 0 : index
    %60 = vector.load %arg9[%c0_28, %c0_29] : memref<128x1xf32, #tpu.memory_space<vmem>>, vector<128x1xf32>
    %cst_30 = arith.constant 1.000000e-01 : f32
    %61 = vector.broadcast %cst_30 : f32 to vector<64x8xf32>
    %62 = arith.mulf %61, %58 : vector<64x8xf32>
    %63 = arith.maximumf %58, %62 : vector<64x8xf32>
    %64 = arith.truncf %63 : vector<64x8xf32> to vector<64x8xbf16>
    %cst_31 = arith.constant dense<0.000000e+00> : vector<128x8xf32>
    %65 = tpu.matmul %59, %64, %cst_31 {dimension_numbers = #tpu.dot_dimension_numbers<[1], [0], [0], [1], [0, 0, 1, 1], [], []>} : vector<128x64xbf16>, vector<64x8xbf16>, vector<128x8xf32> -> vector<128x8xf32>
    %66 = vector.broadcast %60 : vector<128x1xf32> to vector<128x8xf32>
    %67 = arith.addf %65, %66 : vector<128x8xf32>
    %c0_32 = arith.constant 0 : index
    %c0_33 = arith.constant 0 : index
    %68 = vector.load %arg10[%c0_32, %c0_33] : memref<128x384xbf16, #tpu.memory_space<vmem>>, vector<128x384xbf16>
    %c0_34 = arith.constant 0 : index
    %c0_35 = arith.constant 0 : index
    %69 = vector.load %arg11[%c0_34, %c0_35] : memref<128x1xf32, #tpu.memory_space<vmem>>, vector<128x1xf32>
    %cst_36 = arith.constant 1.000000e-01 : f32
    %70 = vector.broadcast %cst_36 : f32 to vector<128x8xf32>
    %71 = arith.mulf %70, %67 : vector<128x8xf32>
    %72 = arith.maximumf %67, %71 : vector<128x8xf32>
    %73 = arith.truncf %72 : vector<128x8xf32> to vector<128x8xbf16>
    %74 = vector.extract_strided_slice %73 {offsets = [120, 0], sizes = [8, 8], strides = [1, 1]} : vector<128x8xbf16> to vector<8x8xbf16>
    %cst_37 = arith.constant 0.000000e+00 : bf16
    %75 = vector.broadcast %cst_37 : bf16 to vector<8x1xbf16>
    %76 = vector.extract_strided_slice %74 {offsets = [0, 0], sizes = [8, 7], strides = [1, 1]} : vector<8x8xbf16> to vector<8x7xbf16>
    %77 = tpu.concatenate %75, %76 in 1 : vector<8x1xbf16>, vector<8x7xbf16> -> vector<8x8xbf16>
    %78 = vector.extract_strided_slice %73 {offsets = [0, 0], sizes = [120, 8], strides = [1, 1]} : vector<128x8xbf16> to vector<120x8xbf16>
    %79 = tpu.concatenate %77, %78 in 0 : vector<8x8xbf16>, vector<120x8xbf16> -> vector<128x8xbf16>
    %80 = vector.extract_strided_slice %73 {offsets = [8, 0], sizes = [120, 8], strides = [1, 1]} : vector<128x8xbf16> to vector<120x8xbf16>
    %81 = vector.extract_strided_slice %73 {offsets = [0, 0], sizes = [8, 8], strides = [1, 1]} : vector<128x8xbf16> to vector<8x8xbf16>
    %82 = vector.extract_strided_slice %81 {offsets = [0, 1], sizes = [8, 7], strides = [1, 1]} : vector<8x8xbf16> to vector<8x7xbf16>
    %cst_38 = arith.constant 0.000000e+00 : bf16
    %83 = vector.broadcast %cst_38 : bf16 to vector<8x1xbf16>
    %84 = tpu.concatenate %82, %83 in 1 : vector<8x7xbf16>, vector<8x1xbf16> -> vector<8x8xbf16>
    %85 = tpu.concatenate %80, %84 in 0 : vector<120x8xbf16>, vector<8x8xbf16> -> vector<128x8xbf16>
    %86 = tpu.concatenate %79, %73, %85 in 0 : vector<128x8xbf16>, vector<128x8xbf16>, vector<128x8xbf16> -> vector<384x8xbf16>
    %cst_39 = arith.constant dense<0.000000e+00> : vector<128x8xf32>
    %87 = tpu.matmul %68, %86, %cst_39 {dimension_numbers = #tpu.dot_dimension_numbers<[1], [0], [0], [1], [0, 0, 1, 1], [], []>} : vector<128x384xbf16>, vector<384x8xbf16>, vector<128x8xf32> -> vector<128x8xf32>
    %88 = vector.broadcast %69 : vector<128x1xf32> to vector<128x8xf32>
    %89 = arith.addf %87, %88 : vector<128x8xf32>
    %90 = arith.addf %67, %89 : vector<128x8xf32>
    %c0_40 = arith.constant 0 : index
    %c0_41 = arith.constant 0 : index
    %91 = vector.load %arg12[%c0_40, %c0_41] : memref<16x896xbf16, #tpu.memory_space<vmem>>, vector<16x896xbf16>
    %c0_42 = arith.constant 0 : index
    %c0_43 = arith.constant 0 : index
    %92 = vector.load %arg13[%c0_42, %c0_43] : memref<16x1xf32, #tpu.memory_space<vmem>>, vector<16x1xf32>
    %cst_44 = arith.constant 1.000000e-01 : f32
    %93 = vector.broadcast %cst_44 : f32 to vector<128x8xf32>
    %94 = arith.mulf %93, %90 : vector<128x8xf32>
    %95 = arith.maximumf %90, %94 : vector<128x8xf32>
    %96 = arith.truncf %95 : vector<128x8xf32> to vector<128x8xbf16>
    %97 = vector.extract_strided_slice %96 {offsets = [104, 0], sizes = [24, 8], strides = [1, 1]} : vector<128x8xbf16> to vector<24x8xbf16>
    %cst_45 = arith.constant 0.000000e+00 : bf16
    %98 = vector.broadcast %cst_45 : bf16 to vector<24x1xbf16>
    %99 = vector.extract_strided_slice %97 {offsets = [0, 0], sizes = [24, 7], strides = [1, 1]} : vector<24x8xbf16> to vector<24x7xbf16>
    %100 = tpu.concatenate %98, %99 in 1 : vector<24x1xbf16>, vector<24x7xbf16> -> vector<24x8xbf16>
    %101 = vector.extract_strided_slice %96 {offsets = [0, 0], sizes = [104, 8], strides = [1, 1]} : vector<128x8xbf16> to vector<104x8xbf16>
    %102 = tpu.concatenate %100, %101 in 0 : vector<24x8xbf16>, vector<104x8xbf16> -> vector<128x8xbf16>
    %103 = vector.extract_strided_slice %96 {offsets = [112, 0], sizes = [16, 8], strides = [1, 1]} : vector<128x8xbf16> to vector<16x8xbf16>
    %cst_46 = arith.constant 0.000000e+00 : bf16
    %104 = vector.broadcast %cst_46 : bf16 to vector<16x1xbf16>
    %105 = vector.extract_strided_slice %103 {offsets = [0, 0], sizes = [16, 7], strides = [1, 1]} : vector<16x8xbf16> to vector<16x7xbf16>
    %106 = tpu.concatenate %104, %105 in 1 : vector<16x1xbf16>, vector<16x7xbf16> -> vector<16x8xbf16>
    %107 = vector.extract_strided_slice %96 {offsets = [0, 0], sizes = [112, 8], strides = [1, 1]} : vector<128x8xbf16> to vector<112x8xbf16>
    %108 = tpu.concatenate %106, %107 in 0 : vector<16x8xbf16>, vector<112x8xbf16> -> vector<128x8xbf16>
    %109 = vector.extract_strided_slice %96 {offsets = [120, 0], sizes = [8, 8], strides = [1, 1]} : vector<128x8xbf16> to vector<8x8xbf16>
    %cst_47 = arith.constant 0.000000e+00 : bf16
    %110 = vector.broadcast %cst_47 : bf16 to vector<8x1xbf16>
    %111 = vector.extract_strided_slice %109 {offsets = [0, 0], sizes = [8, 7], strides = [1, 1]} : vector<8x8xbf16> to vector<8x7xbf16>
    %112 = tpu.concatenate %110, %111 in 1 : vector<8x1xbf16>, vector<8x7xbf16> -> vector<8x8xbf16>
    %113 = vector.extract_strided_slice %96 {offsets = [0, 0], sizes = [120, 8], strides = [1, 1]} : vector<128x8xbf16> to vector<120x8xbf16>
    %114 = tpu.concatenate %112, %113 in 0 : vector<8x8xbf16>, vector<120x8xbf16> -> vector<128x8xbf16>
    %115 = vector.extract_strided_slice %96 {offsets = [8, 0], sizes = [120, 8], strides = [1, 1]} : vector<128x8xbf16> to vector<120x8xbf16>
    %116 = vector.extract_strided_slice %96 {offsets = [0, 0], sizes = [8, 8], strides = [1, 1]} : vector<128x8xbf16> to vector<8x8xbf16>
    %117 = vector.extract_strided_slice %116 {offsets = [0, 1], sizes = [8, 7], strides = [1, 1]} : vector<8x8xbf16> to vector<8x7xbf16>
    %cst_48 = arith.constant 0.000000e+00 : bf16
    %118 = vector.broadcast %cst_48 : bf16 to vector<8x1xbf16>
    %119 = tpu.concatenate %117, %118 in 1 : vector<8x7xbf16>, vector<8x1xbf16> -> vector<8x8xbf16>
    %120 = tpu.concatenate %115, %119 in 0 : vector<120x8xbf16>, vector<8x8xbf16> -> vector<128x8xbf16>
    %121 = vector.extract_strided_slice %96 {offsets = [16, 0], sizes = [112, 8], strides = [1, 1]} : vector<128x8xbf16> to vector<112x8xbf16>
    %122 = vector.extract_strided_slice %96 {offsets = [0, 0], sizes = [16, 8], strides = [1, 1]} : vector<128x8xbf16> to vector<16x8xbf16>
    %123 = vector.extract_strided_slice %122 {offsets = [0, 1], sizes = [16, 7], strides = [1, 1]} : vector<16x8xbf16> to vector<16x7xbf16>
    %cst_49 = arith.constant 0.000000e+00 : bf16
    %124 = vector.broadcast %cst_49 : bf16 to vector<16x1xbf16>
    %125 = tpu.concatenate %123, %124 in 1 : vector<16x7xbf16>, vector<16x1xbf16> -> vector<16x8xbf16>
    %126 = tpu.concatenate %121, %125 in 0 : vector<112x8xbf16>, vector<16x8xbf16> -> vector<128x8xbf16>
    %127 = vector.extract_strided_slice %96 {offsets = [24, 0], sizes = [104, 8], strides = [1, 1]} : vector<128x8xbf16> to vector<104x8xbf16>
    %128 = vector.extract_strided_slice %96 {offsets = [0, 0], sizes = [24, 8], strides = [1, 1]} : vector<128x8xbf16> to vector<24x8xbf16>
    %129 = vector.extract_strided_slice %128 {offsets = [0, 1], sizes = [24, 7], strides = [1, 1]} : vector<24x8xbf16> to vector<24x7xbf16>
    %cst_50 = arith.constant 0.000000e+00 : bf16
    %130 = vector.broadcast %cst_50 : bf16 to vector<24x1xbf16>
    %131 = tpu.concatenate %129, %130 in 1 : vector<24x7xbf16>, vector<24x1xbf16> -> vector<24x8xbf16>
    %132 = tpu.concatenate %127, %131 in 0 : vector<104x8xbf16>, vector<24x8xbf16> -> vector<128x8xbf16>
    %133 = tpu.concatenate %102, %108, %114, %96, %120, %126, %132 in 0 : vector<128x8xbf16>, vector<128x8xbf16>, vector<128x8xbf16>, vector<128x8xbf16>, vector<128x8xbf16>, vector<128x8xbf16>, vector<128x8xbf16> -> vector<896x8xbf16>
    %cst_51 = arith.constant dense<0.000000e+00> : vector<16x8xf32>
    %134 = tpu.matmul %91, %133, %cst_51 {dimension_numbers = #tpu.dot_dimension_numbers<[1], [0], [0], [1], [0, 0, 1, 1], [], []>} : vector<16x896xbf16>, vector<896x8xbf16>, vector<16x8xf32> -> vector<16x8xf32>
    %135 = vector.broadcast %92 : vector<16x1xf32> to vector<16x8xf32>
    %136 = arith.addf %134, %135 : vector<16x8xf32>
    %137 = math.tanh %136 : vector<16x8xf32>
    %c0_52 = arith.constant 0 : index
    %c0_53 = arith.constant 0 : index
    %c0_54 = arith.constant 0 : index
    %138 = vector.load %arg14[%c0_52, %c0_53, %c0_54] : memref<1x16x8xf32, #tpu.memory_space<vmem>>, vector<1x16x8xf32>
    %139 = vector.shape_cast %138 : vector<1x16x8xf32> to vector<16x8xf32>
    %140 = vector.shape_cast %137 : vector<16x8xf32> to vector<1x16x8xf32>
    tpu.vector_store %arg14[%c0_52, %c0_53, %c0_54], %140 {strides = array<i32>} : memref<1x16x8xf32, #tpu.memory_space<vmem>>, vector<1x16x8xf32>,
    return
  }
  func.func @transform_0(%arg0: i32) -> (i32, i32, i32) {
    %c0_i32 = arith.constant 0 : i32
    %c0_i32_0 = arith.constant 0 : i32
    %c0_i32_1 = arith.constant 0 : i32
    return %arg0, %c0_i32, %c0_i32_0 : i32, i32, i32
  }
  func.func @transform_1(%arg0: i32) -> (i32, i32) {
    %c0_i32 = arith.constant 0 : i32
    %c0_i32_0 = arith.constant 0 : i32
    %c0_i32_1 = arith.constant 0 : i32
    return %c0_i32, %c0_i32_0 : i32, i32
  }
  func.func @transform_2(%arg0: i32) -> (i32, i32) {
    %c0_i32 = arith.constant 0 : i32
    %c0_i32_0 = arith.constant 0 : i32
    %c0_i32_1 = arith.constant 0 : i32
    return %c0_i32, %c0_i32_0 : i32, i32
  }
  func.func @transform_3(%arg0: i32) -> (i32, i32) {
    %c0_i32 = arith.constant 0 : i32
    %c0_i32_0 = arith.constant 0 : i32
    %c0_i32_1 = arith.constant 0 : i32
    return %c0_i32, %c0_i32_0 : i32, i32
  }
  func.func @transform_4(%arg0: i32) -> (i32, i32) {
    %c0_i32 = arith.constant 0 : i32
    %c0_i32_0 = arith.constant 0 : i32
    %c0_i32_1 = arith.constant 0 : i32
    return %c0_i32, %c0_i32_0 : i32, i32
  }
  func.func @transform_5(%arg0: i32) -> (i32, i32) {
    %c0_i32 = arith.constant 0 : i32
    %c0_i32_0 = arith.constant 0 : i32
    %c0_i32_1 = arith.constant 0 : i32
    return %c0_i32, %c0_i32_0 : i32, i32
  }
  func.func @transform_6(%arg0: i32) -> (i32, i32) {
    %c0_i32 = arith.constant 0 : i32
    %c0_i32_0 = arith.constant 0 : i32
    %c0_i32_1 = arith.constant 0 : i32
    return %c0_i32, %c0_i32_0 : i32, i32
  }
  func.func @transform_7(%arg0: i32) -> (i32, i32) {
    %c0_i32 = arith.constant 0 : i32
    %c0_i32_0 = arith.constant 0 : i32
    %c0_i32_1 = arith.constant 0 : i32
    return %c0_i32, %c0_i32_0 : i32, i32
  }
  func.func @transform_8(%arg0: i32) -> (i32, i32) {
    %c0_i32 = arith.constant 0 : i32
    %c0_i32_0 = arith.constant 0 : i32
    %c0_i32_1 = arith.constant 0 : i32
    return %c0_i32, %c0_i32_0 : i32, i32
  }
  func.func @transform_9(%arg0: i32) -> (i32, i32) {
    %c0_i32 = arith.constant 0 : i32
    %c0_i32_0 = arith.constant 0 : i32
    %c0_i32_1 = arith.constant 0 : i32
    return %c0_i32, %c0_i32_0 : i32, i32
  }
  func.func @transform_10(%arg0: i32) -> (i32, i32) {
    %c0_i32 = arith.constant 0 : i32
    %c0_i32_0 = arith.constant 0 : i32
    %c0_i32_1 = arith.constant 0 : i32
    return %c0_i32, %c0_i32_0 : i32, i32
  }
  func.func @transform_11(%arg0: i32) -> (i32, i32) {
    %c0_i32 = arith.constant 0 : i32
    %c0_i32_0 = arith.constant 0 : i32
    %c0_i32_1 = arith.constant 0 : i32
    return %c0_i32, %c0_i32_0 : i32, i32
  }
  func.func @transform_12(%arg0: i32) -> (i32, i32) {
    %c0_i32 = arith.constant 0 : i32
    %c0_i32_0 = arith.constant 0 : i32
    %c0_i32_1 = arith.constant 0 : i32
    return %c0_i32, %c0_i32_0 : i32, i32
  }
  func.func @transform_13(%arg0: i32) -> (i32, i32, i32) {
    %c0_i32 = arith.constant 0 : i32
    %c0_i32_0 = arith.constant 0 : i32
    %c0_i32_1 = arith.constant 0 : i32
    return %arg0, %c0_i32, %c0_i32_0 : i32, i32, i32
  }
}

</mosaic_0001>

<bundles_post_ra>
// kernel: firefly_forward.1
= control target key start
LH: loop header
LB: loop body
LE: loop exit
PB: predicated region body
PF: predicated region fallthrough
CT: control target
= control target key end

     0   :  { %s2751_s25 = smov 0   ;;  %s3500_s0 = inlined_call_operand.vmem [shape: f32[2,16,8], index: 0, kind: input, shape index: {}]   ;;  %s3501_s1 = inlined_call_operand.vmem [shape: bf16[32,112], index: 1, kind: input, shape index: {}]   ;;  %s3502_s2 = inlined_call_operand.vmem [shape: f32[32,1], index: 2, kind: input, shape index: {}]   ;;  %s3503_s3 = inlined_call_operand.vmem [shape: bf16[64,32], index: 3, kind: input, shape index: {}]   ;;  %s3504_s4 = inlined_call_operand.vmem [shape: f32[64,1], index: 4, kind: input, shape index: {}]   ;;  %s3505_s5 = inlined_call_operand.vmem [shape: bf16[64,192], index: 5, kind: input, shape index: {}]   ;;  %s3506_s6 = inlined_call_operand.vmem [shape: f32[64,1], index: 6, kind: input, shape index: {}]   ;;  %s3507_s7 = inlined_call_operand.vmem [shape: bf16[128,64], index: 7, kind: input, shape index: {}]   ;;  %s3508_s8 = inlined_call_operand.vmem [shape: f32[128,1], index: 8, kind: input, shape index: {}]   ;;  %s3509_s9 = inlined_call_operand.vmem [shape: bf16[128,384], index: 9, kind: input, shape index: {}]   ;;  %s3510_s10 = inlined_call_operand.vmem [shape: f32[128,1], index: 10, kind: input, shape index: {}]   ;;  %s3511_s11 = inlined_call_operand.vmem [shape: bf16[16,896], index: 11, kind: input, shape index: {}]   ;;  %s3512_s12 = inlined_call_operand.vmem [shape: f32[16,1], index: 12, kind: input, shape index: {}]   ;;  %s3513_s13 = inlined_call_operand.vmem [shape: f32[2,16,8], index: 13, kind: output, shape index: {}]  }
   0x1 LB: > { %s2185_s26 = sadd.s32 4294967295, %s2670_s25   ;;  %p2189_p0 = scmp.ge.s32.totalorder %s2670_s25, 1  ;;  %s2670_s25 = sphi %s2751_s25, %s23_s25  }
   0x2   : > { %p387_p1 = scmp.lt.s32.totalorder %s2670_s25, 3 }
   0x4   : > { %p388_p2 = pnand %p2189_p0, %p387_p1 }
   0x5   : > { %p431_p3 = scmp.lt.s32.totalorder (!%p388_p2), %s2185_s26, 1  ;;  %s2672_s14 = smov (!%p388_p2), 3   ;;  %v2592_v3 = vld [vmem:[%s3501_s1] sm:$0xff] (!%p388_p2)   ;;  %vm521_vm0 = vcmask (!%p388_p2), 916480   ;;  %v449_v4 = vld [vmem:[%s3502_s2 + $0x8] sm:$0xff] (!%p388_p2)  ;;  %v2678_v6 = vmov (!%p388_p2), 0  }
   0x6   : > { %391 = sbr.rel (%p388_p2) target bundleno = 2146 (0x862), region = 72  ;;  %s2673_s15 = smov (!%p388_p2), 1   ;;  %2477 = vmatprep.mubr.msk.bf16.mxu0 (!%p388_p2), %vm521_vm0, %v2592_v3  ;;  %v448_v5 = vld [vmem:[%s3502_s2] sm:$0xff] (!%p388_p2)  ;;  %2591 = vset.pattern.permute.xlu1 (!%p388_p2), %v2678_v6  ;;  %v450_v7 = vld [vmem:[%s3502_s2 + $0x10] sm:$0xff] (!%p388_p2)  ;;  %v451_v8 = vld [vmem:[%s3502_s2 + $0x18] sm:$0xff] (!%p388_p2)  ;;  %vm456_vm1 = vcmask (!%p388_p2), 23552  }
   0x7   : > { %s2674_s16 = smov (!%p388_p2), 2   ;;  %s2675_s17 = smov (!%p388_p2), 127   ;;  %2590 = vset.pattern.permute.xlu0 (!%p388_p2), %v2678_v6  ;;  %v591_v9 = vld [vmem:[%s3504_s4 + $0x30] sm:$0xff] (!%p388_p2)  ;;  %v592_v10 = vld [vmem:[%s3504_s4 + $0x38] sm:$0xff] (!%p388_p2)  ;;  %v585_v11 = vld [vmem:[%s3504_s4] sm:$0xff] (!%p388_p2)  ;;  %vm463_vm3 = vcmask (!%p388_p2), 15360  }
   0x8   : > { %s2676_s18 = smov (!%p388_p2), 126   ;;  %s2677_s19 = smov (!%p388_p2), 125   ;;  %v586_v12 = vld [vmem:[%s3504_s4 + $0x8] sm:$0xff] (!%p388_p2)  ;;  %v587_v13 = vld [vmem:[%s3504_s4 + $0x10] sm:$0xff] (!%p388_p2)  ;;  %v588_v14 = vld [vmem:[%s3504_s4 + $0x18] sm:$0xff] (!%p388_p2)  ;;  %vm469_vm4 = vcmask (!%p388_p2), 7168  }
   0x9   : > { %v589_v15 = vld [vmem:[%s3504_s4 + $0x20] sm:$0xff] (!%p388_p2)  ;;  %v590_v16 = vld [vmem:[%s3504_s4 + $0x28] sm:$0xff] (!%p388_p2)  ;;  %vm2196_vm2 = vmneg (!%p388_p2), %vm456_vm1  ;;  %vm475_vm7 = vcmask (!%p388_p2), 56320   ;;  %vm481_vm8 = vcmask (!%p388_p2), 48128   ;;  %vm487_vm9 = vcmask (!%p388_p2), 39936   ;;  %vm663_vm10 = vcmask (!%p388_p2), 261120  }
   0xa   : > { %vm2198_vm5 = vmneg (!%p388_p2), %vm463_vm3  ;;  %v2593_v27 = vld [vmem:[%s3501_s1 + $0x8] sm:$0xff] (!%p388_p2)   ;;  %v2594_v28 = vld [vmem:[%s3503_s3] sm:$0xff] (!%p388_p2)   ;;  %vm865_vm11 = vcmask (!%p388_p2), 523264   ;;  %vm1345_vm12 = vcmask (!%p388_p2), 1043456   ;;  %vm2680_vm13 = vmmov (!%p388_p2), 0   ;;  %vm2127_vm14 = vcmask (!%p388_p2), 64512  }
   0xb   : > { %vm2812_vm6 = vmneg (!%p388_p2), %vm469_vm4  ;;  %2485 = vmatprep.mubr.msk.bf16.mxu1 (!%p388_p2), %vm663_vm10, %v2594_v28  ;;  %v2595_v51 = vld [vmem:[%s3503_s3 + $0x8] sm:$0xff] (!%p388_p2)   ;;  %v2596_v52 = vld [vmem:[%s3503_s3 + $0x10] sm:$0xff] (!%p388_p2)  }
   0xc   : > { %v2597_v53 = vld [vmem:[%s3503_s3 + $0x18] sm:$0xff] (!%p388_p2)   ;;  %v981_v28 = vld [vmem:[%s3508_s8 + $0x70] sm:$0xff] (!%p388_p2) }
   0xd   : > { %s3517_s26 = smov (!%p431_p3, %s2185_s26), 1 }
   0xe   : > { %s2279_s27 = sshll.u32 %s3517_s26, 4 }
   0xf   : > { %s435_s30 = scalar_lea.vmem %s3500_s0, %s2279_s27 }
  0x10   : > { %v442_v0 = vld [vmem:[%s435_s30] sm:$0xff]  ;;  %v443_v1 = vld [vmem:[%s435_s30 + $0x8] sm:$0xff] }
  0x11   : > { %v452_v2 = vpack.c.bf16 %v443_v1, %v442_v0 }
  0x13   : > { %454 = vrot.lane.b32.xlu0 %v452_v2, %s2672_s14  ;;  %467 = vrot.lane.b32.xlu1 %v452_v2, %s2673_s15 }
  0x17   : > { %461 = vrot.lane.b32.xlu0 %v452_v2, %s2674_s16  ;;  %473 = vrot.lane.b32.xlu1 %v452_v2, %s2675_s17  ;;  %s440_s16 = scalar_lea.vmem %s3513_s13, %s2279_s27 }
  0x1b   : > { %479 = vrot.lane.b32.xlu0 %v452_v2, %s2676_s18  ;;  %485 = vrot.lane.b32.xlu1 %v452_v2, %s2677_s19 }
  0x1f   : > { %498 = vperm.xlu1 %2591, %v449_v4   ;;  %493 = vperm.xlu0 %2590, %v448_v5  }
  0x23   : > { %503 = vperm.xlu1 %2591, %v450_v7   ;;  %508 = vperm.xlu0 %2590, %v451_v8  }
  0x27   : > { %635 = vperm.xlu1 %2591, %v591_v9   ;;  %640 = vperm.xlu0 %2590, %v592_v10  }
  0x2b   : > { %605 = vperm.xlu1 %2591, %v585_v11   ;;  %610 = vperm.xlu0 %2590, %v586_v12  }
  0x2f   : > { %615 = vperm.xlu1 %2591, %v587_v13   ;;  %620 = vperm.xlu0 %2590, %v588_v14   ;;  %v750_v14 = vld [vmem:[%s3506_s6 + $0x8] sm:$0xff] }
  0x33   : > { %625 = vperm.xlu1 %2591, %v589_v15   ;;  %630 = vperm.xlu0 %2590, %v590_v16  }
  0x85   : > { %v455_v17 = vpop.permute.xlu0 %454  ;;  %v468_v19 = vpop.permute.xlu1 %467 }
  0x86   : > { %2463 = vmatprep.subr.msk.bf16.mxu0 %vm2196_vm2, %v455_v17 }
  0x87   : > { %2464 = vmatpush3.bf16.msk.msra.mxu0 %vm2196_vm2, %v455_v17 }
  0x89   : > { %v462_v18 = vpop.permute.xlu0 %461  ;;  %v474_v21 = vpop.permute.xlu1 %473 }
  0x8a   : > { %2465 = vmatprep.subr.msk.bf16.mxu0 %vm2198_vm5, %v462_v18  ;;  %v477_v22 = vsel %vm475_vm7, %v474_v21, 0 }
  0x8b   : > { %2466 = vmatpush3.bf16.msk.msra.mxu0 %vm2198_vm5, %v462_v18  ;;  %v752_v18 = vld [vmem:[%s3506_s6 + $0x18] sm:$0xff] }
  0x8c   : > { %2467 = vmatprep.subr.msk.bf16.mxu0 %vm2812_vm6, %v468_v19 }
  0x8d   : > { %v480_v23 = vpop.permute.xlu0 %479  ;;  %v486_v25 = vpop.permute.xlu1 %485 }
  0x8e   : > { %v483_v24 = vsel %vm481_vm8, %v480_v23, 0  ;;  %v489_v26 = vsel %vm487_vm9, %v486_v25, 0 }
  0x8f   : > { %2468 = vmatpush3.bf16.msk.msra.mxu0 %vm2812_vm6, %v468_v19  ;;  %v749_v19 = vld [vmem:[%s3506_s6] sm:$0xff] }
  0x90   : > { %2469 = vmatprep.subr.bf16.mxu0 %v452_v2 }
  0x93   : > { %2470 = vmatpush3.bf16.msra.mxu0 %v452_v2 }
  0x94   : > { %2569 = vmatprep.subr.msk.bf16.mxu0 %vm475_vm7, %v474_v21  ;;  %v754_v21 = vld [vmem:[%s3506_s6 + $0x28] sm:$0xff] }
  0x97   : > { %2472 = vmatpush3.bf16.msra.mxu0 %v477_v22  ;;  %v751_v22 = vld [vmem:[%s3506_s6 + $0x10] sm:$0xff] }
  0x98   : > { %2570 = vmatprep.subr.msk.bf16.mxu0 %vm481_vm8, %v480_v23  ;;  %v756_v23 = vld [vmem:[%s3506_s6 + $0x38] sm:$0xff] }
  0x9b   : > { %2474 = vmatpush3.bf16.msra.mxu0 %v483_v24  ;;  %v753_v24 = vld [vmem:[%s3506_s6 + $0x20] sm:$0xff] }
  0x9c   : > { %2571 = vmatprep.subr.msk.bf16.mxu0 %vm487_vm9, %v486_v25  ;;  %v982_v25 = vld [vmem:[%s3508_s8 + $0x78] sm:$0xff] }
  0x9e   : > { %v499_v29 = vpop.permute.xlu1 %498  ;;  %v494_v30 = vpop.permute.xlu0 %493 }
  0x9f   : > { %2476 = vmatpush3.bf16.msra.mxu0 %v489_v26  ;;  %v755_v26 = vld [vmem:[%s3506_s6 + $0x30] sm:$0xff] }
  0xa2   : > { %2478 = vmatmul.mubr.msk.bf16.vlgmr.msra.gmra.mrb[0].mxu0 %vm521_vm0, %v2593_v27  ;;  %v504_v31 = vpop.permute.xlu1 %503  ;;  %v509_v35 = vpop.permute.xlu0 %508  ;;  %v968_v27 = vld [vmem:[%s3508_s8 + $0x8] sm:$0xff] }
  0xa6   : > { %v636_v54 = vpop.permute.xlu1 %635  ;;  %v641_v55 = vpop.permute.xlu0 %640 }
  0xaa   : > { %v606_v57 = vpop.permute.xlu1 %605  ;;  %v611_v61 = vpop.permute.xlu0 %610 }
 0x175   : > { %v2479_v32 = vpop.f32.mrb[0].mxu0 }
 0x176   : > { %v571_v33 = vadd.f32 %v2479_v32, %v504_v31  ;;  %v562_v34 = vpop.f32.mrb[1].mxu0  ;;  %v972_v31 = vld [vmem:[%s3508_s8 + $0x28] sm:$0xff]  ;;  %v969_v32 = vld [vmem:[%s3508_s8 + $0x10] sm:$0xff] }
 0x177   : > { %v563_v36 = vadd.f32 %v562_v34, %v494_v30  ;;  %v2480_v37 = vpop.f32.mrb[2].mxu0  ;;  %v967_v30 = vld [vmem:[%s3508_s8] sm:$0xff] }
 0x178   : > { %v595_v38 = vmul.f32 0.1, %v571_v33  ;;  %v574_v39 = vadd.f32 %v2480_v37, %v509_v35  ;;  %v565_v40 = vpop.f32.mrb[3].mxu0  ;;  %v971_v34 = vld [vmem:[%s3508_s8 + $0x20] sm:$0xff]  ;;  %v976_v35 = vld [vmem:[%s3508_s8 + $0x48] sm:$0xff]  ;;  %v973_v37 = vld [vmem:[%s3508_s8 + $0x30] sm:$0xff] }
 0x179   : > { %v593_v41 = vmul.f32 0.1, %v563_v36  ;;  %v566_v42 = vadd.f32 %v565_v40, %v499_v29  ;;  %v970_v29 = vld [vmem:[%s3508_s8 + $0x18] sm:$0xff]  ;;  %v979_v40 = vld [vmem:[%s3508_s8 + $0x60] sm:$0xff] }
 0x17a   : > { %v596_v43 = vmul.f32 0.1, %v574_v39  ;;  %v599_v45 = vmax.f32 %v571_v33, %v595_v38  ;;  %v974_v33 = vld [vmem:[%s3508_s8 + $0x38] sm:$0xff]  ;;  %v977_v38 = vld [vmem:[%s3508_s8 + $0x50] sm:$0xff] }
 0x17b   : > { %v594_v44 = vmul.f32 0.1, %v566_v42  ;;  %v597_v47 = vmax.f32 %v563_v36, %v593_v41  ;;  %v2600_v36 = vld [vmem:[%s3505_s5 + $0x4] ss:$8 sps:$4 sm:$0xff]   ;;  %v616_v41 = vpop.permute.xlu1 %615 }
 0x17c   : > { %v600_v46 = vmax.f32 %v574_v39, %v596_v43  ;;  %v975_v39 = vld [vmem:[%s3508_s8 + $0x40] sm:$0xff] }
 0x17d   : > { %v598_v48 = vmax.f32 %v566_v42, %v594_v44  ;;  %v621_v42 = vpop.permute.xlu0 %620 }
 0x17e   : > { %v602_v49 = vpack.c.bf16 %v600_v46, %v599_v45 }
 0x17f   : > { %v601_v50 = vpack.c.bf16 %v598_v48, %v597_v47  ;;  %v626_v44 = vpop.permute.xlu1 %625 }
 0x181   : > { %2481 = vmatprep.subr.bf16.mxu1 %v601_v50  ;;  %v631_v46 = vpop.permute.xlu0 %630 }
 0x182   : > { %2482 = vmatpush3.bf16.msra.mxu1 %v601_v50 }
 0x183   : > { %2483 = vmatprep.subr.bf16.mxu1 %v602_v49 }
 0x186   : > { %2484 = vmatpush3.bf16.msra.mxu1 %v602_v49 }
 0x187   : > { %878 = vmatprep.subr.bf16.mxu1 %v2678_v6 }
 0x189   : > { %2486 = vmatmul.mubr.msk.bf16.vlgmr.msra.gmra.mrb[0].mxu1 %vm663_vm10, %v2595_v51 }
 0x18a   : > { %2489 = vmatprep.mubr.msk.bf16.mxu1 %vm663_vm10, %v2596_v52 }
 0x191   : > { %2490 = vmatmul.mubr.msk.bf16.gmra.mrb[4].mxu1 %vm663_vm10, %v2597_v53 }
 0x192   : > { %2222 = vmatprep.mubr.msk.bf16.mxu1 %vm865_vm11, %v2600_v36 }
 0x25c   : > { %v2843_v56 = vpop.f32.mrb[0].mxu1 }
 0x25d   : > { %v710_v58 = vpop.f32.mrb[1].mxu1  ;;  %v2947_v45 = vadd.f32 %v2843_v56, %v616_v41 }
 0x25e   : > { %v2845_v59 = vadd.f32 %v710_v58, %v606_v57  ;;  %v2847_v60 = vpop.f32.mrb[2].mxu1 }
 0x25f   : > { %v713_v62 = vpop.f32.mrb[3].mxu1  ;;  %v2944_v43 = vadd.f32 %v2847_v60, %v621_v42  ;;  %v759_v50 = vmul.f32 0.1, %v2947_v45 }
 0x260   : > { %v757_v63 = vmul.f32 0.1, %v2845_v59  ;;  %v2850_v0 = vadd.f32 %v713_v62, %v611_v61 }
 0x261   : > { %v760_v47 = vmul.f32 0.1, %v2944_v43 }
 0x262   : > { %v758_v1 = vmul.f32 0.1, %v2850_v0  ;;  %v765_v2 = vmax.f32 %v2845_v59, %v757_v63  ;;  %v2598_v63 = vld [vmem:[%s3505_s5] ss:$8 sps:$4 sm:$0xff]  }
 0x263   : > { %v768_v52 = vmax.f32 %v2944_v43, %v760_v47 }
 0x264   : > { %v766_v3 = vmax.f32 %v2850_v0, %v758_v1  ;;  %v2491_v4 = vpop.f32.mrb[4].mxu1  ;;  %v2601_v1 = vld [vmem:[%s3505_s5 + $0x14] ss:$8 sps:$4 sm:$0xff]  }
 0x265   : > { %v2855_v5 = vadd.f32 %v2491_v4, %v636_v54  ;;  %v2857_v7 = vpop.f32.mrb[5].mxu1  ;;  %v767_v54 = vmax.f32 %v2947_v45, %v759_v50  ;;  %v2607_v4 = vld [vmem:[%s3505_s5 + $0x34] ss:$8 sps:$4 sm:$0xff]  }
 0x266   : > { %v2492_v8 = vpop.f32.mrb[6].mxu1  ;;  %v2859_v9 = vpack.c.bf16 %v766_v3, %v765_v2  ;;  %v2954_v51 = vadd.f32 %v2857_v7, %v626_v44  ;;  %v2603_v2 = vld [vmem:[%s3505_s5 + $0x10] ss:$8 sps:$4 sm:$0xff]   ;;  %v2606_v3 = vld [vmem:[%s3505_s5 + $0x20] ss:$8 sps:$4 sm:$0xff]  }
 0x267   : > { %v763_v10 = vmul.f32 0.1, %v2855_v5  ;;  %v2862_v11 = vadd.f32 %v2492_v8, %v641_v55  ;;  %v729_v12 = vpop.f32.mrb[7].mxu1  ;;  %v774_v56 = vpack.c.bf16 %v768_v52, %v767_v54  ;;  %v2609_v7 = vld [vmem:[%s3505_s5 + $0x30] ss:$8 sps:$4 sm:$0xff]   ;;  %v2610_v8 = vld [vmem:[%s3507_s7] sm:$0xff]  }
 0x268   : > { %784 = vrot.lane.b32.xlu0 %v2859_v9, %s2675_s17  ;;  %v2950_v48 = vadd.f32 %v729_v12, %v631_v46  ;;  %v761_v55 = vmul.f32 0.1, %v2954_v51  ;;  %2501 = vmatprep.mubr.msk.bf16.mxu0 %vm865_vm11, %v2610_v8  ;;  %v2611_v8 = vld [vmem:[%s3507_s7 + $0x8] sm:$0xff]  }
 0x269   : > { %v764_v13 = vmul.f32 0.1, %v2862_v11  ;;  %v771_v15 = vmax.f32 %v2855_v5, %v763_v10 }
 0x26a   : > { %v762_v53 = vmul.f32 0.1, %v2950_v48  ;;  %v769_v58 = vmax.f32 %v2954_v51, %v761_v55 }
 0x26b   : > { %v772_v16 = vmax.f32 %v2862_v11, %v764_v13 }
 0x26c   : > { %796 = vperm.xlu0 %2590, %v750_v14   ;;  %v770_v57 = vmax.f32 %v2950_v48, %v762_v53 }
 0x26d   : > { %v2872_v17 = vpack.c.bf16 %v772_v16, %v771_v15 }
 0x26e   : > { %v775_v60 = vpack.c.bf16 %v770_v57, %v769_v58 }
 0x26f   : > { %778 = vrot.lane.b32.xlu1 %v2872_v17, %s2673_s15 }
 0x270   : > { %806 = vperm.xlu0 %2590, %v752_v18  }
 0x273   : > { %791 = vperm.xlu1 %2591, %v749_v19  }
 0x274   : > { %816 = vperm.xlu0 %2590, %v754_v21  }
 0x277   : > { %801 = vperm.xlu1 %2591, %v751_v22  }
 0x278   : > { %826 = vperm.xlu0 %2590, %v756_v23  }
 0x27b   : > { %811 = vperm.xlu1 %2591, %v753_v24  }
 0x27c   : > { %1080 = vperm.xlu0 %2590, %v982_v25  }
 0x27f   : > { %821 = vperm.xlu1 %2591, %v755_v26  }
 0x280   : > { %1010 = vperm.xlu0 %2590, %v968_v27  }
 0x283   : > { %1075 = vperm.xlu1 %2591, %v981_v28  }
 0x284   : > { %1020 = vperm.xlu0 %2590, %v970_v29  }
 0x287   : > { %1005 = vperm.xlu1 %2591, %v967_v30  }
 0x288   : > { %1030 = vperm.xlu0 %2590, %v972_v31  }
 0x28b   : > { %1015 = vperm.xlu1 %2591, %v969_v32  }
 0x28c   : > { %1040 = vperm.xlu0 %2590, %v974_v33  }
 0x28f   : > { %1025 = vperm.xlu1 %2591, %v971_v34  }
 0x290   : > { %1050 = vperm.xlu0 %2590, %v976_v35  }
 0x293   : > { %1035 = vperm.xlu1 %2591, %v973_v37  }
 0x294   : > { %1055 = vperm.xlu0 %2590, %v977_v38  }
 0x297   : > { %1045 = vperm.xlu1 %2591, %v975_v39  }
 0x298   : > { %1065 = vperm.xlu0 %2590, %v979_v40  }
 0x2da   : > { %v785_v61 = vpop.permute.xlu0 %784 }
 0x2db   : > { %v787_v62 = vsel %vm475_vm7, %v785_v61, 0 }
 0x2e1   : > { %v779_v49 = vpop.permute.xlu1 %778 }
 0x2e2   : > { %2221 = vmatpush1.bf16.msk.msra.mxu1 %vm2812_vm6, %v779_v49 }
 0x2e3   : > { %880 = vmatprep.subr.bf16.mxu1 %v2678_v6 }
 0x2e6   : > { %881 = vmatpush1.bf16.msra.mxu1 %v2859_v9 }
 0x2e7   : > { %882 = vmatprep.subr.bf16.mxu1 %v2678_v6 }
 0x2ea   : > { %883 = vmatpush1.bf16.msra.mxu1 %v774_v56 }
 0x2eb   : > { %884 = vmatprep.subr.bf16.mxu1 %v2678_v6  ;;  %v797_v14 = vpop.permute.xlu0 %796 }
 0x2ee   : > { %885 = vmatpush1.bf16.msra.mxu1 %v775_v60 }
 0x2ef   : > { %886 = vmatprep.subr.bf16.mxu1 %v2678_v6  ;;  %v807_v29 = vpop.permute.xlu0 %806 }
 0x2f2   : > { %887 = vmatpush1.bf16.msra.mxu1 %v2859_v9  ;;  %v792_v9 = vpop.permute.xlu1 %791 }
 0x2f3   : > { %888 = vmatprep.subr.bf16.mxu1 %v2678_v6  ;;  %v817_v42 = vpop.permute.xlu0 %816 }
 0x2f6   : > { %889 = vmatpush1.bf16.msra.mxu1 %v774_v56  ;;  %v802_v23 = vpop.permute.xlu1 %801 }
 0x2f7   : > { %890 = vmatprep.subr.bf16.mxu1 %v2678_v6 }
 0x2fa   : > { %891 = vmatpush1.bf16.msra.mxu1 %v775_v60  ;;  %v812_v36 = vpop.permute.xlu1 %811 }
 0x2fb   : > { %892 = vmatprep.subr.bf16.mxu1 %v2678_v6 }
 0x2fe   : > { %893 = vmatpush1.bf16.msra.mxu1 %v2872_v17  ;;  %v822_v53 = vpop.permute.xlu1 %821 }
 0x2ff   : > { %894 = vmatprep.subr.bf16.mxu1 %v2678_v6 }
 0x302   : > { %895 = vmatpush1.bf16.msra.mxu1 %v774_v56 }
 0x303   : > { %896 = vmatprep.subr.bf16.mxu1 %v2678_v6 }
 0x306   : > { %897 = vmatpush1.bf16.msra.mxu1 %v775_v60  ;;  %v827_v60 = vpop.permute.xlu0 %826 }
 0x307   : > { %898 = vmatprep.subr.bf16.mxu1 %v2678_v6 }
 0x30a   : > { %899 = vmatpush1.bf16.msra.mxu1 %v2872_v17 }
 0x30b   : > { %900 = vmatprep.subr.bf16.mxu1 %v2678_v6  ;;  %v2604_v6 = vld [vmem:[%s3505_s5 + $0x24] ss:$8 sps:$4 sm:$0xff]  }
 0x30e   : > { %901 = vmatpush1.bf16.msra.mxu1 %v787_v62 }
 0x311   : > { %911 = vmatmul.mubr.bf16.vlgmr.msra.gmra.mrb[8].mxu1 %v2598_v63 }
 0x312   : > { %2223 = vmatprep.mubr.msk.bf16.mxu1 %vm865_vm11, %v2601_v1 }
 0x319   : > { %919 = vmatmul.mubr.bf16.gmra.mrb[12].mxu1 %v2603_v2 }
 0x31a   : > { %2224 = vmatprep.mubr.msk.bf16.mxu1 %vm865_vm11, %v2604_v6 }
 0x321   : > { %927 = vmatmul.mubr.bf16.gmra.mrb[16].mxu1 %v2606_v3 }
 0x322   : > { %2225 = vmatprep.mubr.msk.bf16.mxu1 %vm865_vm11, %v2607_v4 }
 0x329   : > { %935 = vmatmul.mubr.bf16.gmra.mrb[20].mxu1 %v2609_v7 }
 0x3e4   : > { %v912_v10 = vpop.f32.mrb[8].mxu1 }
 0x3e5   : > { %v913_v12 = vadd.f32 %v912_v10, %v792_v9  ;;  %v914_v13 = vpop.f32.mrb[9].mxu1  ;;  %v2614_v9 = vld [vmem:[%s3507_s7 + $0x20] sm:$0xff]   ;;  %v2615_v10 = vld [vmem:[%s3507_s7 + $0x28] sm:$0xff]  }
 0x3e6   : > { %v915_v15 = vpop.f32.mrb[10].mxu1  ;;  %v2617_v13 = vld [vmem:[%s3507_s7 + $0x38] sm:$0xff]  }
 0x3e7   : > { %v943_v16 = vadd.f32 %v913_v12, %v2845_v59  ;;  %v916_v17 = vadd.f32 %v915_v15, %v797_v14  ;;  %v917_v18 = vpop.f32.mrb[11].mxu1  ;;  %v2616_v12 = vld [vmem:[%s3507_s7 + $0x30] sm:$0xff]   ;;  %v3044_v14 = vpop.permute.xlu1 %1075 }
 0x3e8   : > { %v3046_v15 = vpop.permute.xlu0 %1080 }
 0x3e9   : > { %v983_v19 = vmul.f32 0.1, %v943_v16  ;;  %v944_v21 = vadd.f32 %v916_v17, %v2850_v0 }
 0x3eb   : > { %v984_v22 = vmul.f32 0.1, %v944_v21  ;;  %v991_v25 = vmax.f32 %v943_v16, %v983_v19  ;;  %v1006_v16 = vpop.permute.xlu1 %1005 }
 0x3ec   : > { %v920_v24 = vpop.f32.mrb[12].mxu1  ;;  %v1011_v17 = vpop.permute.xlu0 %1010 }
 0x3ed   : > { %v992_v26 = vmax.f32 %v944_v21, %v984_v22  ;;  %v921_v27 = vadd.f32 %v920_v24, %v802_v23  ;;  %v922_v28 = vpop.f32.mrb[13].mxu1 }
 0x3ee   : > { %v923_v30 = vpop.f32.mrb[14].mxu1 }
 0x3ef   : > { %v945_v31 = vadd.f32 %v921_v27, %v2947_v45  ;;  %v924_v32 = vadd.f32 %v923_v30, %v807_v29  ;;  %v925_v33 = vpop.f32.mrb[15].mxu1  ;;  %v999_v34 = vpack.c.bf16 %v992_v26, %v991_v25  ;;  %v1016_v18 = vpop.permute.xlu1 %1015 }
 0x3f0   : > { %v1021_v19 = vpop.permute.xlu0 %1020 }
 0x3f1   : > { %v985_v59 = vmul.f32 0.1, %v945_v31  ;;  %v946_v35 = vadd.f32 %v924_v32, %v2944_v43  ;;  %2493 = vmatprep.subr.bf16.mxu0 %v999_v34 }
 0x3f2   : > { %2494 = vmatpush3.bf16.msra.mxu0 %v999_v34 }
 0x3f3   : > { %v986_v0 = vmul.f32 0.1, %v946_v35  ;;  %v993_v38 = vmax.f32 %v945_v31, %v985_v59  ;;  %v1026_v24 = vpop.permute.xlu1 %1025 }
 0x3f4   : > { %v928_v37 = vpop.f32.mrb[16].mxu1  ;;  %v1031_v30 = vpop.permute.xlu0 %1030 }
 0x3f5   : > { %v994_v39 = vmax.f32 %v946_v35, %v986_v0  ;;  %v929_v40 = vadd.f32 %v928_v37, %v812_v36  ;;  %v930_v41 = vpop.f32.mrb[17].mxu1 }
 0x3f6   : > { %v931_v44 = vpop.f32.mrb[18].mxu1 }
 0x3f7   : > { %v947_v46 = vadd.f32 %v929_v40, %v2954_v51  ;;  %v932_v45 = vadd.f32 %v931_v44, %v817_v42  ;;  %v933_v47 = vpop.f32.mrb[19].mxu1  ;;  %v1000_v49 = vpack.c.bf16 %v994_v39, %v993_v38  ;;  %v1036_v0 = vpop.permute.xlu1 %1035 }
 0x3f8   : > { %v1041_v42 = vpop.permute.xlu0 %1040 }
 0x3f9   : > { %v987_v50 = vmul.f32 0.1, %v947_v46  ;;  %v948_v52 = vadd.f32 %v932_v45, %v2950_v48  ;;  %2495 = vmatprep.subr.bf16.mxu0 %v1000_v49 }
 0x3fa   : > { %2496 = vmatpush3.bf16.msra.mxu0 %v1000_v49 }
 0x3fb   : > { %v988_v43 = vmul.f32 0.1, %v948_v52  ;;  %v995_v55 = vmax.f32 %v947_v46, %v987_v50 }
 0x3fc   : > { %v936_v54 = vpop.f32.mrb[20].mxu1 }
 0x3fd   : > { %v996_v56 = vmax.f32 %v948_v52, %v988_v43  ;;  %v937_v57 = vadd.f32 %v936_v54, %v822_v53  ;;  %v938_v58 = vpop.f32.mrb[21].mxu1 }
 0x3fe   : > { %v939_v61 = vpop.f32.mrb[22].mxu1 }
 0x3ff   : > { %v949_v62 = vadd.f32 %v937_v57, %v2855_v5  ;;  %v940_v51 = vadd.f32 %v939_v61, %v827_v60  ;;  %v941_v63 = vpop.f32.mrb[23].mxu1  ;;  %v1001_v1 = vpack.c.bf16 %v996_v56, %v995_v55  ;;  %v2612_v5 = vld [vmem:[%s3507_s7 + $0x10] sm:$0xff]   ;;  %v1289_v56 = vld [vmem:[%s3510_s10 + $0x68] sm:$0xff] }
 0x401   : > { %v989_v2 = vmul.f32 0.1, %v949_v62  ;;  %v950_v6 = vadd.f32 %v940_v51, %v2862_v11  ;;  %2497 = vmatprep.subr.bf16.mxu0 %v1001_v1  ;;  %v2613_v11 = vld [vmem:[%s3507_s7 + $0x18] sm:$0xff]  }
 0x402   : > { %2498 = vmatpush3.bf16.msra.mxu0 %v1001_v1  ;;  %v1046_v1 = vpop.permute.xlu1 %1045 }
 0x403   : > { %v990_v48 = vmul.f32 0.1, %v950_v6  ;;  %v997_v3 = vmax.f32 %v949_v62, %v989_v2 }
 0x405   : > { %v998_v4 = vmax.f32 %v950_v6, %v990_v48  ;;  %v1291_v48 = vld [vmem:[%s3510_s10 + $0x78] sm:$0xff] }
 0x407   : > { %v1002_v7 = vpack.c.bf16 %v998_v4, %v997_v3 }
 0x409   : > { %2499 = vmatprep.subr.bf16.mxu0 %v1002_v7 }
 0x40a   : > { %2500 = vmatpush3.bf16.msra.mxu0 %v1002_v7 }
 0x40d   : > { %2502 = vmatmul.mubr.msk.bf16.vlgmr.msra.gmra.mrb[4].mxu0 %vm865_vm11, %v2611_v8  ;;  %v1051_v8 = vpop.permute.xlu0 %1050 }
 0x40e   : > { %2505 = vmatprep.mubr.msk.bf16.mxu0 %vm865_vm11, %v2612_v5 }
 0x415   : > { %2506 = vmatmul.mubr.msk.bf16.gmra.mrb[8].mxu0 %vm865_vm11, %v2613_v11 }
 0x416   : > { %2509 = vmatprep.mubr.msk.bf16.mxu0 %vm865_vm11, %v2614_v9 }
 0x41d   : > { %2510 = vmatmul.mubr.msk.bf16.gmra.mrb[12].mxu0 %vm865_vm11, %v2615_v10 }
 0x41e   : > { %2513 = vmatprep.mubr.msk.bf16.mxu0 %vm865_vm11, %v2616_v12 }
 0x425   : > { %2514 = vmatmul.mubr.msk.bf16.gmra.mrb[16].mxu0 %vm865_vm11, %v2617_v13  ;;  %v1277_v13 = vld [vmem:[%s3510_s10 + $0x8] sm:$0xff] }
 0x4e0   : > { %v2503_v21 = vpop.f32.mrb[4].mxu0 }
 0x4e1   : > { %v3048_v22 = vadd.f32 %v2503_v21, %v1016_v18  ;;  %v1181_v23 = vpop.f32.mrb[5].mxu0 }
 0x4e2   : > { %v3050_v25 = vadd.f32 %v1181_v23, %v1006_v16  ;;  %v2504_v26 = vpop.f32.mrb[6].mxu0 }
 0x4e3   : > { %v1294_v27 = vmul.f32 0.1, %v3048_v22  ;;  %v3053_v28 = vadd.f32 %v2504_v26, %v1021_v19  ;;  %v1184_v29 = vpop.f32.mrb[7].mxu0 }
 0x4e4   : > { %v1292_v31 = vmul.f32 0.1, %v3050_v25  ;;  %v3056_v32 = vadd.f32 %v1184_v29, %v1011_v17 }
 0x4e5   : > { %v1295_v33 = vmul.f32 0.1, %v3053_v28  ;;  %v1310_v59 = vmax.f32 %v3048_v22, %v1294_v27  ;;  %v1279_v27 = vld [vmem:[%s3510_s10 + $0x18] sm:$0xff] }
 0x4e6   : > { %v1293_v34 = vmul.f32 0.1, %v3056_v32  ;;  %v1308_v36 = vmax.f32 %v3050_v25, %v1292_v31 }
 0x4e7   : > { %v1311_v35 = vmax.f32 %v3053_v28, %v1295_v33 }
 0x4e8   : > { %v1309_v37 = vmax.f32 %v3056_v32, %v1293_v34  ;;  %v2507_v38 = vpop.f32.mrb[8].mxu0 }
 0x4e9   : > { %v3064_v39 = vpack.c.bf16 %v1311_v35, %v1310_v59  ;;  %v3066_v40 = vadd.f32 %v2507_v38, %v1036_v0  ;;  %v1197_v41 = vpop.f32.mrb[9].mxu0  ;;  %v1281_v35 = vld [vmem:[%s3510_s10 + $0x28] sm:$0xff] }
 0x4ea   : > { %v3068_v44 = vadd.f32 %v1197_v41, %v1026_v24  ;;  %v2508_v46 = vpop.f32.mrb[10].mxu0  ;;  %v3070_v45 = vpack.c.bf16 %v1309_v37, %v1308_v36  ;;  %v1283_v37 = vld [vmem:[%s3510_s10 + $0x38] sm:$0xff] }
 0x4eb   : > { %v1298_v47 = vmul.f32 0.1, %v3066_v40  ;;  %v3073_v49 = vadd.f32 %v2508_v46, %v1041_v42  ;;  %v1200_v50 = vpop.f32.mrb[11].mxu0  ;;  %v1347_v52 = vrot.slane %v3064_v39, 4  ;;  %v1285_v42 = vld [vmem:[%s3510_s10 + $0x48] sm:$0xff]  ;;  %v978_v46 = vld [vmem:[%s3508_s8 + $0x58] sm:$0xff] }
 0x4ec   : > { %v1296_v43 = vmul.f32 0.1, %v3068_v44  ;;  %v3077_v53 = vadd.f32 %v1200_v50, %v1031_v30  ;;  %1371 = vrot.lane.b32.xlu0 %v3070_v45, %s2675_s17  ;;  %2308 = vmatprep.subr.bf16.mxu0 %v3070_v45  ;;  %v1346_v54 = vrot.slane %v3070_v45, 4  ;;  %v1288_v50 = vld [vmem:[%s3510_s10 + $0x60] sm:$0xff] }
 0x4ed   : > { %v1299_v55 = vmul.f32 0.1, %v3073_v49  ;;  %v1314_v60 = vmax.f32 %v3066_v40, %v1298_v47  ;;  %v980_v47 = vld [vmem:[%s3508_s8 + $0x68] sm:$0xff] }
 0x4ee   : > { %v1297_v57 = vmul.f32 0.1, %v3077_v53  ;;  %v3091_v58 = vsel %vm1345_vm12, %v1346_v54, %v1347_v52  ;;  %v1312_v62 = vmax.f32 %v3068_v44, %v1296_v43  ;;  %v1276_v43 = vld [vmem:[%s3510_s10] sm:$0xff] }
 0x4ef   : > { %v1315_v61 = vmax.f32 %v3073_v49, %v1299_v55  ;;  %2517 = vmatprep.subr.bf16.mxu1 %v3091_v58  ;;  %v1278_v55 = vld [vmem:[%s3510_s10 + $0x10] sm:$0xff] }
 0x4f0   : > { %v1313_v51 = vmax.f32 %v3077_v53, %v1297_v57  ;;  %v3098_v63 = vpop.f32.mrb[12].mxu0  ;;  %1448 = vperm.xlu0 %2590, %v1289_v56   ;;  %2518 = vmatpush3.bf16.msra.mxu1 %v3091_v58  ;;  %v2620_v56 = vld [vmem:[%s3509_s9 + $0x4] ss:$12 sps:$4 sm:$0xff]  }
 0x4f1   : > { %v3101_v2 = vpack.c.bf16 %v1315_v61, %v1314_v60  ;;  %v1213_v6 = vpop.f32.mrb[13].mxu0  ;;  %v1280_v57 = vld [vmem:[%s3510_s10 + $0x20] sm:$0xff]  ;;  %1621 = vmatprep.mubr.bf16.mxu0 %v2620_v56  ;;  %v2621_v60 = vld [vmem:[%s3509_s9 + $0x8] ss:$12 sps:$4 sm:$0xff]  }
 0x4f2   : > { %v3106_v3 = vpack.c.bf16 %v1313_v51, %v1312_v62  ;;  %v3108_v4 = vadd.f32 %v1213_v6, %v1046_v1  ;;  %v3110_v7 = vpop.f32.mrb[14].mxu0  ;;  %v1282_v61 = vld [vmem:[%s3510_s10 + $0x30] sm:$0xff]  ;;  %2533 = vmatprep.mubr.bf16.mxu1 %v2621_v60  ;;  %v1284_v62 = vld [vmem:[%s3510_s10 + $0x40] sm:$0xff] }
 0x4f3   : > { %v1216_v5 = vpop.f32.mrb[15].mxu0  ;;  %v1351_v12 = vrot.slane %v3101_v2, 4  ;;  %v1286_v51 = vld [vmem:[%s3510_s10 + $0x50] sm:$0xff]  ;;  %v2636_v56 = vld [vmem:[%s3509_s9 + $0x60] ss:$12 sps:$4 sm:$0xff]  }
 0x4f4   : > { %v1300_v11 = vmul.f32 0.1, %v3108_v4  ;;  %v3113_v9 = vadd.f32 %v1216_v5, %v1051_v8  ;;  %1458 = vperm.xlu0 %2590, %v1291_v48   ;;  %v1349_v10 = vrot.slane %v3106_v3, 4  ;;  %v1056_v8 = vpop.permute.xlu0 %1055  ;;  %v2641_v60 = vld [vmem:[%s3509_s9 + $0x78] ss:$12 sps:$4 sm:$0xff]  }
 0x4f5   : > { %v3218_v5 = vadd.f32 %v3098_v63, %v1056_v8 }
 0x4f6   : > { %v1301_v16 = vmul.f32 0.1, %v3113_v9  ;;  %v3122_v17 = vsel %vm1345_vm12, %v1347_v52, %v1349_v10  ;;  %v1316_v18 = vmax.f32 %v3108_v4, %v1300_v11  ;;  %v3129_v23 = vsel %vm1345_vm12, %v1349_v10, %v1351_v12  ;;  %v1290_v52 = vld [vmem:[%s3510_s10 + $0x70] sm:$0xff] }
 0x4f7   : > { %2519 = vmatprep.subr.bf16.mxu1 %v3122_v17 }
 0x4f8   : > { %v1317_v19 = vmax.f32 %v3113_v9, %v1301_v16  ;;  %v2515_v21 = vpop.f32.mrb[16].mxu0  ;;  %1388 = vperm.xlu0 %2590, %v1277_v13   ;;  %2520 = vmatpush3.bf16.msra.mxu1 %v3122_v17  ;;  %v1066_v45 = vpop.permute.xlu0 %1065 }
 0x4f9   : > { %v3132_v24 = vadd.f32 %v2515_v21, %v3044_v14  ;;  %v3134_v26 = vpop.f32.mrb[17].mxu0  ;;  %2521 = vmatprep.subr.bf16.mxu1 %v3129_v23 }
 0x4fa   : > { %v3140_v29 = vpack.c.bf16 %v1317_v19, %v1316_v18  ;;  %v2516_v30 = vpop.f32.mrb[18].mxu0 }
 0x4fb   : > { %v1306_v31 = vmul.f32 0.1, %v3132_v24  ;;  %v3144_v33 = vadd.f32 %v2516_v30, %v3046_v15  ;;  %v3146_v34 = vpop.f32.mrb[19].mxu0 }
 0x4fc   : > { %1398 = vperm.xlu0 %2590, %v1279_v27   ;;  %2522 = vmatpush3.bf16.msra.mxu1 %v3129_v23  ;;  %v1353_v14 = vrot.slane %v3140_v29, 4 }
 0x4fd   : > { %v1307_v59 = vmul.f32 0.1, %v3144_v33  ;;  %v1322_v15 = vmax.f32 %v3132_v24, %v1306_v31 }
 0x4fe   : > { %v1354_v0 = vsel %vm1345_vm12, %v1351_v12, %v1353_v14 }
 0x4ff   : > { %v1323_v36 = vmax.f32 %v3144_v33, %v1307_v59  ;;  %2523 = vmatprep.subr.bf16.mxu1 %v1354_v0  ;;  %v2623_v59 = vld [vmem:[%s3509_s9 + $0x1c] ss:$12 sps:$4 sm:$0xff]  }
 0x500   : > { %1408 = vperm.xlu0 %2590, %v1281_v35   ;;  %2524 = vmatpush3.bf16.msra.mxu1 %v1354_v0 }
 0x501   : > { %v3162_v38 = vpack.c.bf16 %v1323_v36, %v1322_v15  ;;  %v2629_v15 = vld [vmem:[%s3509_s9 + $0x38] ss:$12 sps:$4 sm:$0xff]  }
 0x502   : > { %v2625_v36 = vld [vmem:[%s3509_s9 + $0x18] ss:$12 sps:$4 sm:$0xff]  }
 0x503   : > { %v3165_v41 = vrot.slane %v3162_v38, 4 }
 0x504   : > { %1418 = vperm.xlu0 %2590, %v1283_v37   ;;  %v2626_v37 = vld [vmem:[%s3509_s9 + $0x34] ss:$12 sps:$4 sm:$0xff]  }
 0x505   : > { %1334 = vrot.lane.b32.xlu1 %v3165_v41, %s2673_s15 }
 0x508   : > { %1428 = vperm.xlu0 %2590, %v1285_v42   ;;  %v2628_v42 = vld [vmem:[%s3509_s9 + $0x30] ss:$12 sps:$4 sm:$0xff]  }
 0x509   : > { %1060 = vperm.xlu1 %2591, %v978_v46   ;;  %v2631_v46 = vld [vmem:[%s3509_s9 + $0x4c] ss:$12 sps:$4 sm:$0xff]  }
 0x50d   : > { %1070 = vperm.xlu1 %2591, %v980_v47   ;;  %v2638_v47 = vld [vmem:[%s3509_s9 + $0x80] ss:$12 sps:$4 sm:$0xff]  }
 0x511   : > { %1443 = vperm.xlu1 %2591, %v1288_v50   ;;  %v2645_v50 = vld [vmem:[%s3509_s9 + $0x98] ss:$12 sps:$4 sm:$0xff]  }
 0x515   : > { %1453 = vperm.xlu1 %2591, %v1290_v52   ;;  %v2633_v52 = vld [vmem:[%s3509_s9 + $0x48] ss:$12 sps:$4 sm:$0xff]  }
 0x519   : > { %1383 = vperm.xlu1 %2591, %v1276_v43   ;;  %v2634_v43 = vld [vmem:[%s3509_s9 + $0x64] ss:$12 sps:$4 sm:$0xff]  }
 0x51d   : > { %1393 = vperm.xlu1 %2591, %v1278_v55   ;;  %v2646_v55 = vld [vmem:[%s3509_s9 + $0xb0] ss:$12 sps:$4 sm:$0xff]  }
 0x521   : > { %1403 = vperm.xlu1 %2591, %v1280_v57   ;;  %v2639_v57 = vld [vmem:[%s3509_s9 + $0x7c] ss:$12 sps:$4 sm:$0xff]  }
 0x525   : > { %1413 = vperm.xlu1 %2591, %v1282_v61   ;;  %v2642_v61 = vld [vmem:[%s3509_s9 + $0x94] ss:$12 sps:$4 sm:$0xff]  }
 0x529   : > { %1423 = vperm.xlu1 %2591, %v1284_v62   ;;  %v2644_v62 = vld [vmem:[%s3509_s9 + $0x90] ss:$12 sps:$4 sm:$0xff]  }
 0x52d   : > { %1433 = vperm.xlu1 %2591, %v1286_v51   ;;  %v2647_v51 = vld [vmem:[%s3509_s9 + $0xac] ss:$12 sps:$4 sm:$0xff]  }
 0x55e   : > { %v1372_v21 = vpop.permute.xlu0 %1371 }
 0x55f   : > { %v1374_v30 = vsel %vm475_vm7, %v1372_v21, 0 }
 0x577   : > { %v1335_v1 = vpop.permute.xlu1 %1334 }
 0x578   : > { %v1337_v6 = vsel %vm469_vm4, 0, %v1335_v1  ;;  %v2649_v1 = vld [vmem:[%s3509_s9 + $0xa8] ss:$12 sps:$4 sm:$0xff]  }
 0x579   : > { %v1369_v48 = vsel %vm1345_vm12, %v1337_v6, %v1346_v54 }
 0x57a   : > { %2309 = vmatpush3.bf16.msra.mxu0 %v1369_v48  ;;  %v3317_v48 = vpop.permute.xlu0 %1448 }
 0x57b   : > { %2310 = vmatprep.subr.bf16.mxu0 %v3064_v39  ;;  %v1302_v39 = vmul.f32 0.1, %v3218_v5 }
 0x57d   : > { %v1318_v63 = vmax.f32 %v3218_v5, %v1302_v39 }
 0x57e   : > { %2311 = vmatpush3.bf16.msra.mxu0 %v3091_v58  ;;  %v3224_v58 = vadd.f32 %v3134_v26, %v1066_v45  ;;  %v3321_v45 = vpop.permute.xlu0 %1458 }
 0x57f   : > { %2312 = vmatprep.subr.bf16.mxu0 %v3106_v3 }
 0x580   : > { %v1304_v10 = vmul.f32 0.1, %v3224_v58 }
 0x582   : > { %2313 = vmatpush3.bf16.msra.mxu0 %v3122_v17  ;;  %v1320_v18 = vmax.f32 %v3224_v58, %v1304_v10 }
 0x583   : > { %2314 = vmatprep.subr.bf16.mxu0 %v3101_v2 }
 0x586   : > { %2315 = vmatpush3.bf16.msra.mxu0 %v3129_v23 }
 0x587   : > { %2316 = vmatprep.subr.bf16.mxu0 %v3140_v29 }
 0x588   : > { %v1061_v54 = vpop.permute.xlu1 %1060 }
 0x589   : > { %v3227_v3 = vadd.f32 %v3110_v7, %v1061_v54 }
 0x58a   : > { %2317 = vmatpush3.bf16.msra.mxu0 %v1354_v0  ;;  %v2622_v0 = vld [vmem:[%s3509_s9 + $0x20] ss:$12 sps:$4 sm:$0xff]  }
 0x58b   : > { %v1303_v2 = vmul.f32 0.1, %v3227_v3 }
 0x58c   : > { %v1071_v11 = vpop.permute.xlu1 %1070 }
 0x58d   : > { %v1319_v12 = vmax.f32 %v3227_v3, %v1303_v2  ;;  %v3234_v13 = vadd.f32 %v3146_v34, %v1071_v11  ;;  %v1376_v34 = vrot.slane %v1374_v30, 4 }
 0x58f   : > { %v1305_v16 = vmul.f32 0.1, %v3234_v13  ;;  %v1329_v17 = vpack.c.bf16 %v1319_v12, %v1318_v63  ;;  %v1379_v35 = vsel %vm1345_vm12, %v3165_v41, %v1376_v34 }
 0x590   : > { %v3315_v6 = vpop.permute.xlu1 %1443 }
 0x591   : > { %v1321_v7 = vmax.f32 %v3234_v13, %v1305_v16  ;;  %v1355_v19 = vrot.slane %v1329_v17, 4  ;;  %2318 = vmatprep.subr.bf16.mxu0 %v1329_v17  ;;  %v1389_v17 = vpop.permute.xlu0 %1388 }
 0x593   : > { %v1356_v23 = vsel %vm1345_vm12, %v1353_v14, %v1355_v19  ;;  %v1330_v26 = vpack.c.bf16 %v1321_v7, %v1320_v18  ;;  %v2618_v14 = vld [vmem:[%s3509_s9] ss:$12 sps:$4 sm:$0xff]  }
 0x594   : > { %2319 = vmatpush3.bf16.msra.mxu0 %v1356_v23  ;;  %2525 = vmatprep.subr.bf16.mxu1 %v1356_v23  ;;  %v3319_v8 = vpop.permute.xlu1 %1453 }
 0x595   : > { %v1357_v27 = vrot.slane %v1330_v26, 4  ;;  %2320 = vmatprep.subr.bf16.mxu0 %v1330_v26  ;;  %2526 = vmatpush3.bf16.msra.mxu1 %v1356_v23 }
 0x597   : > { %v1358_v31 = vsel %vm1345_vm12, %v1355_v19, %v1357_v27  ;;  %v1359_v29 = vsel %vm1345_vm12, %v1357_v27, %v3165_v41  ;;  %v2637_v41 = vld [vmem:[%s3509_s9 + $0x68] ss:$12 sps:$4 sm:$0xff]  }
 0x598   : > { %2321 = vmatpush3.bf16.msra.mxu0 %v1358_v31  ;;  %2527 = vmatprep.subr.bf16.mxu1 %v1358_v31  ;;  %v1384_v63 = vpop.permute.xlu1 %1383 }
 0x599   : > { %2322 = vmatprep.subr.bf16.mxu0 %v3162_v38  ;;  %2528 = vmatpush3.bf16.msra.mxu1 %v1358_v31  ;;  %v2630_v38 = vld [vmem:[%s3509_s9 + $0x50] ss:$12 sps:$4 sm:$0xff]  }
 0x59a   : > { %2529 = vmatprep.subr.bf16.mxu1 %v1359_v29 }
 0x59c   : > { %2323 = vmatpush3.bf16.msra.mxu0 %v1359_v29 }
 0x59d   : > { %2530 = vmatpush3.bf16.msra.mxu1 %v1359_v29 }
 0x59e   : > { %2531 = vmatprep.subr.bf16.mxu1 %v1379_v35 }
 0x59f   : > { %1622 = vmatmul.mubr.bf16.vlgmr.msra.gmra.mrb[20].mxu0 %v2618_v14 }
 0x5a0   : > { %1629 = vmatprep.mubr.bf16.mxu0 %v2623_v59  ;;  %v1394_v59 = vpop.permute.xlu1 %1393 }
 0x5a1   : > { %2532 = vmatpush3.bf16.msra.mxu1 %v1379_v35 }
 0x5a4   : > { %2534 = vmatmul.mubr.bf16.vlgmr.msra.gmra.mrb[24].mxu1 %v2622_v0 }
 0x5a5   : > { %2537 = vmatprep.mubr.bf16.mxu1 %v2629_v15 }
 0x5a7   : > { %1630 = vmatmul.mubr.bf16.gmra.mrb[24].mxu0 %v2625_v36 }
 0x5a8   : > { %1637 = vmatprep.mubr.bf16.mxu0 %v2626_v37 }
 0x5ac   : > { %2538 = vmatmul.mubr.bf16.gmra.mrb[28].mxu1 %v2630_v38  ;;  %v1399_v38 = vpop.permute.xlu0 %1398 }
 0x5ad   : > { %2541 = vmatprep.mubr.bf16.mxu1 %v2637_v41 }
 0x5af   : > { %1638 = vmatmul.mubr.bf16.gmra.mrb[28].mxu0 %v2628_v42 }
 0x5b0   : > { %1645 = vmatprep.mubr.bf16.mxu0 %v2631_v46 }
 0x5b4   : > { %2542 = vmatmul.mubr.bf16.gmra.mrb[32].mxu1 %v2638_v47 }
 0x5b5   : > { %2545 = vmatprep.mubr.bf16.mxu1 %v2645_v50 }
 0x5b7   : > { %1646 = vmatmul.mubr.bf16.gmra.mrb[32].mxu0 %v2633_v52 }
 0x5b8   : > { %1653 = vmatprep.mubr.bf16.mxu0 %v2634_v43 }
 0x5bc   : > { %2546 = vmatmul.mubr.bf16.gmra.mrb[36].mxu1 %v2646_v55 }
 0x5bf   : > { %1654 = vmatmul.mubr.bf16.gmra.mrb[36].mxu0 %v2636_v56 }
 0x5c0   : > { %1661 = vmatprep.mubr.bf16.mxu0 %v2639_v57 }
 0x5c7   : > { %1662 = vmatmul.mubr.bf16.gmra.mrb[40].mxu0 %v2641_v60 }
 0x5c8   : > { %1669 = vmatprep.mubr.bf16.mxu0 %v2642_v61 }
 0x5cf   : > { %1670 = vmatmul.mubr.bf16.gmra.mrb[44].mxu0 %v2644_v62 }
 0x5d0   : > { %1677 = vmatprep.mubr.bf16.mxu0 %v2647_v51 }
 0x5d7   : > { %1678 = vmatmul.mubr.bf16.gmra.mrb[48].mxu0 %v2649_v1 }
 0x672   : > { %v2324_v54 = vpop.f32.mrb[20].mxu0 }
 0x673   : > { %v2325_v39 = vpop.f32.mrb[21].mxu0 }
 0x674   : > { %v2326_v2 = vadd.f32 %v2325_v39, %v2324_v54  ;;  %v2327_v11 = vpop.f32.mrb[22].mxu0  ;;  %v1404_v39 = vpop.permute.xlu1 %1403 }
 0x675   : > { %v2328_v10 = vpop.f32.mrb[23].mxu0 }
 0x676   : > { %v2329_v12 = vadd.f32 %v2328_v10, %v2327_v11  ;;  %v1624_v16 = vadd.f32 %v2326_v2, %v1384_v63 }
 0x677   : > { %v2535_v18 = vpop.f32.mrb[24].mxu1 }
 0x678   : > { %v1720_v7 = vpop.f32.mrb[25].mxu1  ;;  %v1627_v19 = vadd.f32 %v2329_v12, %v1389_v17  ;;  %v1409_v12 = vpop.permute.xlu0 %1408 }
 0x679   : > { %v1721_v21 = vadd.f32 %v1720_v7, %v1624_v16  ;;  %v2536_v23 = vpop.f32.mrb[26].mxu1 }
 0x67a   : > { %v2330_v26 = vpop.f32.mrb[24].mxu0  ;;  %v1723_v27 = vpop.f32.mrb[27].mxu1 }
 0x67b   : > { %v1783_v30 = vadd.f32 %v1721_v21, %v3050_v25  ;;  %v1724_v31 = vadd.f32 %v1723_v27, %v1627_v19  ;;  %v2331_v34 = vpop.f32.mrb[25].mxu0 }
 0x67c   : > { %v2332_v29 = vadd.f32 %v2331_v34, %v2330_v26  ;;  %v2333_v14 = vpop.f32.mrb[26].mxu0 }
 0x67d   : > { %v1809_v35 = vmul.f32 0.1, %v1783_v30  ;;  %v1784_v0 = vadd.f32 %v1724_v31, %v3056_v32  ;;  %v2334_v15 = vpop.f32.mrb[27].mxu0 }
 0x67e   : > { %v1632_v36 = vadd.f32 %v2332_v29, %v1394_v59  ;;  %v2335_v37 = vadd.f32 %v2334_v15, %v2333_v14 }
 0x67f   : > { %v1810_v41 = vmul.f32 0.1, %v1784_v0  ;;  %v2539_v42 = vpop.f32.mrb[28].mxu1  ;;  %v1825_v52 = vmax.f32 %v1783_v30, %v1809_v35  ;;  %v1414_v35 = vpop.permute.xlu1 %1413 }
 0x680   : > { %v1729_v46 = vadd.f32 %v2535_v18, %v1632_v36  ;;  %v1635_v47 = vadd.f32 %v2335_v37, %v1399_v38  ;;  %v1736_v50 = vpop.f32.mrb[29].mxu1  ;;  %v1419_v38 = vpop.permute.xlu0 %1418 }
 0x681   : > { %v1826_v43 = vmax.f32 %v1784_v0, %v1810_v41  ;;  %v2540_v25 = vpop.f32.mrb[30].mxu1 }
 0x682   : > { %v1785_v55 = vadd.f32 %v1729_v46, %v3048_v22  ;;  %v1732_v56 = vadd.f32 %v2536_v23, %v1635_v47  ;;  %v2336_v57 = vpop.f32.mrb[28].mxu0  ;;  %v1739_v60 = vpop.f32.mrb[31].mxu1 }
 0x683   : > { %v3326_v61 = vpack.c.bf16 %v1826_v43, %v1825_v52  ;;  %v2337_v32 = vpop.f32.mrb[29].mxu0 }
 0x684   : > { %v1811_v62 = vmul.f32 0.1, %v1785_v55  ;;  %v1786_v51 = vadd.f32 %v1732_v56, %v3053_v28  ;;  %v2338_v1 = vadd.f32 %v2337_v32, %v2336_v57  ;;  %v2339_v54 = vpop.f32.mrb[30].mxu0 }
 0x685   : > { %v2340_v2 = vpop.f32.mrb[31].mxu0  ;;  %2410 = vmatprep.subr.bf16.mxu0 %v3326_v61 }
 0x686   : > { %v1812_v11 = vmul.f32 0.1, %v1786_v51  ;;  %v2341_v63 = vadd.f32 %v2340_v2, %v2339_v54  ;;  %v1640_v10 = vadd.f32 %v2338_v1, %v1404_v39  ;;  %v1827_v16 = vmax.f32 %v1785_v55, %v1811_v62  ;;  %v1424_v39 = vpop.permute.xlu1 %1423 }
 0x687   : > { %v3330_v22 = vpop.f32.mrb[32].mxu1 }
 0x688   : > { %v1828_v17 = vmax.f32 %v1786_v51, %v1812_v11  ;;  %v1737_v18 = vadd.f32 %v1736_v50, %v1640_v10  ;;  %v1643_v7 = vadd.f32 %v2341_v63, %v1409_v12  ;;  %v1752_v19 = vpop.f32.mrb[33].mxu1  ;;  %v1429_v10 = vpop.permute.xlu0 %1428 }
 0x689   : > { %v3332_v21 = vpop.f32.mrb[34].mxu1 }
 0x68a   : > { %v3334_v28 = vpack.c.bf16 %v1828_v17, %v1827_v16  ;;  %v1787_v23 = vadd.f32 %v1737_v18, %v3068_v44  ;;  %v1740_v26 = vadd.f32 %v1739_v60, %v1643_v7  ;;  %v2342_v27 = vpop.f32.mrb[32].mxu0  ;;  %v1755_v30 = vpop.f32.mrb[35].mxu1 }
 0x68b   : > { %v2343_v31 = vpop.f32.mrb[33].mxu0 }
 0x68c   : > { %v1813_v34 = vmul.f32 0.1, %v1787_v23  ;;  %v1788_v29 = vadd.f32 %v1740_v26, %v3077_v53  ;;  %v2344_v14 = vadd.f32 %v2343_v31, %v2342_v27  ;;  %v2345_v59 = vpop.f32.mrb[34].mxu0 }
 0x68d   : > { %v2346_v0 = vpop.f32.mrb[35].mxu0 }
 0x68e   : > { %v1814_v15 = vmul.f32 0.1, %v1788_v29  ;;  %v1648_v36 = vadd.f32 %v2344_v14, %v1414_v35  ;;  %v2347_v37 = vadd.f32 %v2346_v0, %v2345_v59  ;;  %v1829_v46 = vmax.f32 %v1787_v23, %v1813_v34  ;;  %v1434_v14 = vpop.permute.xlu1 %1433 }
 0x68f   : > { %v3338_v41 = vpop.f32.mrb[36].mxu1 }
 0x690   : > { %v1830_v47 = vmax.f32 %v1788_v29, %v1814_v15  ;;  %v1745_v44 = vadd.f32 %v2539_v42, %v1648_v36  ;;  %v1651_v50 = vadd.f32 %v2347_v37, %v1419_v38  ;;  %v1768_v52 = vpop.f32.mrb[37].mxu1 }
 0x691   : > { %v3340_v43 = vpop.f32.mrb[38].mxu1 }
 0x692   : > { %v3342_v55 = vpack.c.bf16 %v1830_v47, %v1829_v46  ;;  %v1789_v53 = vadd.f32 %v1745_v44, %v3066_v40  ;;  %v1748_v56 = vadd.f32 %v2540_v25, %v1651_v50  ;;  %v2348_v57 = vpop.f32.mrb[36].mxu0  ;;  %v1771_v60 = vpop.f32.mrb[39].mxu1 }
 0x693   : > { %v2349_v32 = vpop.f32.mrb[37].mxu0 }
 0x694   : > { %v1815_v62 = vmul.f32 0.1, %v1789_v53  ;;  %v1790_v51 = vadd.f32 %v1748_v56, %v3073_v49  ;;  %v2350_v1 = vadd.f32 %v2349_v32, %v2348_v57  ;;  %v2351_v54 = vpop.f32.mrb[38].mxu0  ;;  %v1872_v35 = vrot.slane %v3342_v55, 4 }
 0x695   : > { %v2352_v2 = vpop.f32.mrb[39].mxu0 }
 0x696   : > { %v1816_v42 = vmul.f32 0.1, %v1790_v51  ;;  %v2353_v11 = vadd.f32 %v2352_v2, %v2351_v54  ;;  %v1656_v63 = vadd.f32 %v2350_v1, %v1424_v39  ;;  %v1831_v12 = vmax.f32 %v1789_v53, %v1815_v62 }
 0x698   : > { %v1832_v16 = vmax.f32 %v1790_v51, %v1816_v42  ;;  %v1753_v17 = vadd.f32 %v1752_v19, %v1656_v63  ;;  %v1659_v18 = vadd.f32 %v2353_v11, %v1429_v10 }
 0x69a   : > { %v1791_v40 = vadd.f32 %v1753_v17, %v3108_v4  ;;  %v1756_v25 = vadd.f32 %v1755_v30, %v1659_v18  ;;  %v2354_v7 = vpop.f32.mrb[40].mxu0  ;;  %v3347_v23 = vpack.c.bf16 %v1832_v16, %v1831_v12 }
 0x69b   : > { %v2355_v26 = vpop.f32.mrb[41].mxu0 }
 0x69c   : > { %v1817_v49 = vmul.f32 0.1, %v1791_v40  ;;  %v1792_v27 = vadd.f32 %v1756_v25, %v3113_v9  ;;  %v2356_v31 = vadd.f32 %v2355_v26, %v2354_v7  ;;  %v2357_v34 = vpop.f32.mrb[42].mxu0  ;;  %v1874_v29 = vrot.slane %v3347_v23, 4 }
 0x69d   : > { %v2358_v59 = vpop.f32.mrb[43].mxu0 }
 0x69e   : > { %v1818_v19 = vmul.f32 0.1, %v1792_v27  ;;  %v1664_v0 = vadd.f32 %v2356_v31, %v1434_v14  ;;  %v3352_v15 = vadd.f32 %v2358_v59, %v2357_v34  ;;  %v3357_v4 = vsel %vm1345_vm12, %v1872_v35, %v1874_v29  ;;  %v2652_v31 = vld [vmem:[%s3511_s11 + $0x4] ss:$28 sps:$4 sm:$0xff]   ;;  %v2655_v34 = vld [vmem:[%s3511_s11 + $0xc] ss:$28 sps:$4 sm:$0xff]  }
 0x69f   : > { %v1833_v30 = vmax.f32 %v1791_v40, %v1817_v49  ;;  %1993 = vmatprep.mubr.bf16.mxu1 %v2652_v31  ;;  %2034 = vmatprep.mubr.bf16.mxu0 %v2655_v34 }
 0x6a0   : > { %v1834_v36 = vmax.f32 %v1792_v27, %v1818_v19  ;;  %v3360_v9 = vadd.f32 %v3330_v22, %v1664_v0  ;;  %v1807_v27 = vld [vmem:[%s3512_s12] sm:$0xff]  ;;  %v1869_v19 = vrot.slane %v3326_v61, 4 }
 0x6a2   : > { %v3362_v37 = vpack.c.bf16 %v1834_v36, %v1833_v30  ;;  %v2360_v38 = vpop.f32.mrb[44].mxu0  ;;  %v1870_v36 = vrot.slane %v3334_v28, 4 }
 0x6a3   : > { %v2361_v46 = vpop.f32.mrb[45].mxu0 }
 0x6a4   : > { %v2362_v47 = vadd.f32 %v2361_v46, %v2360_v38  ;;  %v2363_v44 = vpop.f32.mrb[46].mxu0  ;;  %v1876_v50 = vrot.slane %v3362_v37, 4  ;;  %v1871_v38 = vsel %vm1345_vm12, %v1869_v19, %v1870_v36  ;;  %v1873_v20 = vsel %vm1345_vm12, %v1870_v36, %v1872_v35 }
 0x6a5   : > { %v2364_v53 = vpop.f32.mrb[47].mxu0  ;;  %v1793_v46 = vadd.f32 %v3360_v9, %v3218_v5  ;;  %v2658_v9 = vld [vmem:[%s3511_s11 + $0x14] ss:$28 sps:$4 sm:$0xff]  }
 0x6a6   : > { %v2365_v56 = vadd.f32 %v2364_v53, %v2363_v44  ;;  %v1672_v57 = vadd.f32 %v2362_v47, %v3315_v6  ;;  %v3369_v32 = vsel %vm1345_vm12, %v1874_v29, %v1876_v50 }
 0x6a7   : > { %v1819_v44 = vmul.f32 0.1, %v1793_v46 }
 0x6a8   : > { %v1769_v62 = vadd.f32 %v1768_v52, %v1672_v57  ;;  %v1675_v22 = vadd.f32 %v2365_v56, %v3317_v48 }
 0x6a9   : > { %v1835_v57 = vmax.f32 %v1793_v46, %v1819_v44 }
 0x6aa   : > { %v1795_v51 = vadd.f32 %v1769_v62, %v3224_v58  ;;  %v1772_v1 = vadd.f32 %v1771_v60, %v1675_v22  ;;  %v2366_v54 = vpop.f32.mrb[48].mxu0 }
 0x6ab   : > { %v2367_v39 = vpop.f32.mrb[49].mxu0 }
 0x6ac   : > { %v1821_v2 = vmul.f32 0.1, %v1795_v51  ;;  %v1796_v42 = vadd.f32 %v1772_v1, %v3234_v13  ;;  %v2368_v11 = vadd.f32 %v2367_v39, %v2366_v54  ;;  %v2369_v63 = vpop.f32.mrb[50].mxu0  ;;  %v2656_v1 = vld [vmem:[%s3511_s11 + $0x10] ss:$28 sps:$4 sm:$0xff]  }
 0x6ad   : > { %v2370_v10 = vpop.f32.mrb[51].mxu0 }
 0x6ae   : > { %v1822_v6 = vmul.f32 0.1, %v1796_v42  ;;  %v1680_v12 = vadd.f32 %v2368_v11, %v3319_v8  ;;  %v2371_v16 = vadd.f32 %v2370_v10, %v2369_v63  ;;  %v1837_v17 = vmax.f32 %v1795_v51, %v1821_v2  ;;  %v2659_v2 = vld [vmem:[%s3511_s11 + $0x18] ss:$28 sps:$4 sm:$0xff]  }
 0x6af   : > { %v2679_v51 = vmov 0.0  }
 0x6b0   : > { %v1838_v18 = vmax.f32 %v1796_v42, %v1822_v6  ;;  %v1777_v52 = vadd.f32 %v3338_v41, %v1680_v12  ;;  %v1683_v48 = vadd.f32 %v2371_v16, %v3321_v45 }
 0x6b2   : > { %v3377_v58 = vpack.c.bf16 %v1838_v18, %v1837_v17  ;;  %v1797_v60 = vadd.f32 %v1777_v52, %v3132_v24  ;;  %v1780_v40 = vadd.f32 %v3340_v43, %v1683_v48  ;;  %v1808_v43 = vld [vmem:[%s3512_s12 + $0x8] sm:$0xff] }
 0x6b4   : > { %v1823_v13 = vmul.f32 0.1, %v1797_v60  ;;  %v1798_v25 = vadd.f32 %v1780_v40, %v3144_v33  ;;  %v1851_v41 = vrot.slane %v3377_v58, 4  ;;  %v1287_v33 = vld [vmem:[%s3510_s10 + $0x58] sm:$0xff] }
 0x6b6   : > { %v1824_v7 = vmul.f32 0.1, %v1798_v25  ;;  %v1839_v26 = vmax.f32 %v1797_v60, %v1823_v13 }
 0x6b8   : > { %v1840_v49 = vmax.f32 %v1798_v25, %v1824_v7 }
 0x6ba   : > { %v3382_v8 = vpack.c.bf16 %v1840_v49, %v1839_v26 }
 0x6bc   : > { %1890 = vrot.lane.b32.xlu1 %v3382_v8, %s2673_s15  ;;  %v3388_v45 = vrot.slane %v3382_v8, 4 }
 0x6be   : > { %v3394_v24 = vsel %vm1345_vm12, %v1851_v41, %v3388_v45 }
 0x6bf   : > { %1854 = vrot.lane.b32.xlu0 %v3394_v24, %s2673_s15 }
 0x6c0   : > { %1856 = vrot.lane.b32.xlu1 %v3388_v45, %s2673_s15 }
 0x6c3   : > { %1438 = vperm.xlu0 %2590, %v1287_v33  }
 0x6c4   : > { %1907 = vrot.lane.b32.xlu1 %v3334_v28, %s2675_s17 }
 0x6c7   : > { %1896 = vrot.lane.b32.xlu0 %v3326_v61, %s2675_s17 }
 0x6c8   : > { %1922 = vperm.xlu1 %2591, %v1808_v43  }
 0x6cb   : > { %1917 = vperm.xlu0 %2590, %v1807_v27  }
 0x72e   : > { %v1891_v29 = vpop.permute.xlu1 %1890 }
 0x72f   : > { %2388 = vmatprep.subr.msk.bf16.mxu1 %vm2812_vm6, %v1891_v29 }
 0x731   : > { %v1855_v14 = vpop.permute.xlu0 %1854 }
 0x732   : > { %v1857_v59 = vpop.permute.xlu1 %1856  ;;  %2389 = vmatpush3.bf16.msk.msra.mxu1 %vm2812_vm6, %v1855_v14 }
 0x733   : > { %v1862_v0 = vsel %vm469_vm4, 0, %v1857_v59  ;;  %2390 = vmatprep.subr.bf16.mxu1 %v3326_v61 }
 0x734   : > { %v1888_v30 = vsel %vm1345_vm12, %v1862_v0, %v1869_v19 }
 0x735   : > { %2411 = vmatpush3.bf16.msra.mxu0 %v1888_v30 }
 0x736   : > { %2391 = vmatpush3.bf16.msra.mxu1 %v1888_v30  ;;  %2412 = vmatprep.subr.bf16.mxu0 %v3334_v28 }
 0x737   : > { %2392 = vmatprep.subr.bf16.mxu1 %v3334_v28 }
 0x739   : > { %2413 = vmatpush3.bf16.msra.mxu0 %v1871_v38 }
 0x73a   : > { %2393 = vmatpush3.bf16.msra.mxu1 %v1871_v38  ;;  %2414 = vmatprep.subr.bf16.mxu0 %v3342_v55 }
 0x73b   : > { %2394 = vmatprep.subr.bf16.mxu1 %v3342_v55 }
 0x73d   : > { %2415 = vmatpush3.bf16.msra.mxu0 %v1873_v20 }
 0x73e   : > { %2395 = vmatpush3.bf16.msra.mxu1 %v1873_v20  ;;  %2416 = vmatprep.subr.bf16.mxu0 %v3347_v23 }
 0x73f   : > { %2396 = vmatprep.subr.bf16.mxu1 %v3347_v23 }
 0x741   : > { %2417 = vmatpush3.bf16.msra.mxu0 %v3357_v4 }
 0x742   : > { %2397 = vmatpush3.bf16.msra.mxu1 %v3357_v4  ;;  %2418 = vmatprep.subr.bf16.mxu0 %v3362_v37  ;;  %v1439_v61 = vpop.permute.xlu0 %1438 }
 0x743   : > { %v1667_v47 = vadd.f32 %v3352_v15, %v1439_v61  ;;  %2398 = vmatprep.subr.bf16.mxu1 %v3362_v37 }
 0x745   : > { %v1764_v35 = vadd.f32 %v3332_v21, %v1667_v47  ;;  %2419 = vmatpush3.bf16.msra.mxu0 %v3369_v32  ;;  %v2650_v21 = vld [vmem:[%s3511_s11] ss:$28 sps:$4 sm:$0xff]  }
 0x746   : > { %2399 = vmatpush3.bf16.msra.mxu1 %v3369_v32 }
 0x747   : > { %v1794_v53 = vadd.f32 %v1764_v35, %v3227_v3 }
 0x749   : > { %v1820_v56 = vmul.f32 0.1, %v1794_v53 }
 0x74b   : > { %v1836_v62 = vmax.f32 %v1794_v53, %v1820_v56 }
 0x74d   : > { %v1846_v22 = vpack.c.bf16 %v1836_v62, %v1835_v57 }
 0x74f   : > { %2400 = vmatprep.subr.bf16.mxu1 %v1846_v22  ;;  %2420 = vmatprep.subr.bf16.mxu0 %v1846_v22  ;;  %v1878_v5 = vrot.slane %v1846_v22, 4 }
 0x751   : > { %v1879_v15 = vsel %vm1345_vm12, %v1876_v50, %v1878_v5  ;;  %v1880_v3 = vsel %vm1345_vm12, %v1878_v5, %v1851_v41  ;;  %v2653_v50 = vld [vmem:[%s3511_s11 + $0x8] ss:$28 sps:$4 sm:$0xff]  }
 0x752   : > { %2401 = vmatpush3.bf16.msra.mxu1 %v1879_v15  ;;  %2421 = vmatpush3.bf16.msra.mxu0 %v1879_v15 }
 0x753   : > { %2402 = vmatprep.subr.bf16.mxu1 %v3377_v58  ;;  %2422 = vmatprep.subr.bf16.mxu0 %v3377_v58 }
 0x756   : > { %2403 = vmatpush3.bf16.msra.mxu1 %v1880_v3  ;;  %2423 = vmatpush3.bf16.msra.mxu0 %v1880_v3 }
 0x757   : > { %2424 = vmatprep.subr.bf16.mxu0 %v3382_v8  ;;  %2432 = vmatprep.subr.bf16.mxu1 %v3334_v28  ;;  %v1897_v28 = vpop.permute.xlu0 %1896 }
 0x759   : > { %1994 = vmatmul.mubr.bf16.vlgmr.msra.gmra.mrb[40].mxu1 %v2650_v21 }
 0x75a   : > { %2425 = vmatpush3.bf16.msra.mxu0 %v3394_v24  ;;  %2433 = vmatpush3.bf16.msra.mxu1 %v1871_v38 }
 0x75b   : > { %2434 = vmatprep.subr.bf16.mxu1 %v3342_v55  ;;  %2549 = vmatprep.subr.bf16.mxu0 %v2679_v51  ;;  %v1899_v55 = vsel %vm475_vm7, %v1897_v28, 0  ;;  %v1918_v17 = vpop.permute.xlu0 %1917 }
 0x75c   : > { %2075 = vmatprep.mubr.bf16.mxu1 %v2658_v9 }
 0x75d   : > { %2035 = vmatmul.mubr.bf16.vlgmr.msra.gmra.mrb[52].mxu0 %v2653_v50 }
 0x75e   : > { %2435 = vmatpush3.bf16.msra.mxu1 %v1873_v20  ;;  %2550 = vmatpush3.bf16.msra.mxu0 %v1873_v20 }
 0x75f   : > { %2436 = vmatprep.subr.bf16.mxu1 %v3347_v23  ;;  %2551 = vmatprep.subr.bf16.mxu0 %v2679_v51  ;;  %v1908_v23 = vpop.permute.xlu1 %1907 }
 0x760   : > { %2565 = vmatprep.mubr.msk.bf16.mxu0 %vm2680_vm13, %v2679_v51 }
 0x762   : > { %2437 = vmatpush3.bf16.msra.mxu1 %v3357_v4  ;;  %2552 = vmatpush3.bf16.msra.mxu0 %v3357_v4  ;;  %v1901_v4 = vrot.slane %v1899_v55, 4 }
 0x763   : > { %2438 = vmatprep.subr.bf16.mxu1 %v3362_v37  ;;  %2553 = vmatprep.subr.bf16.mxu0 %v2679_v51  ;;  %v1910_v37 = vsel %vm475_vm7, %v1908_v23, 0  ;;  %v1923_v60 = vpop.permute.xlu1 %1922 }
 0x764   : > { %v1912_v54 = vrot.slane %v1910_v37, 4 }
 0x766   : > { %2439 = vmatpush3.bf16.msra.mxu1 %v3369_v32  ;;  %2554 = vmatpush3.bf16.msra.mxu0 %v3369_v32  ;;  %v1904_v32 = vsel %vm1345_vm12, %v3388_v45, %v1901_v4  ;;  %v1913_v39 = vsel %vm1345_vm12, %v1901_v4, %v1912_v54 }
 0x767   : > { %2440 = vmatprep.subr.bf16.mxu1 %v1846_v22  ;;  %2555 = vmatprep.subr.bf16.mxu0 %v2679_v51 }
 0x76a   : > { %2441 = vmatpush3.bf16.msra.mxu1 %v1879_v15  ;;  %2556 = vmatpush3.bf16.msra.mxu0 %v1879_v15 }
 0x76b   : > { %2442 = vmatprep.subr.bf16.mxu1 %v3377_v58  ;;  %2557 = vmatprep.subr.bf16.mxu0 %v2679_v51 }
 0x76e   : > { %2443 = vmatpush3.bf16.msra.mxu1 %v1880_v3  ;;  %2558 = vmatpush3.bf16.msra.mxu0 %v1880_v3 }
 0x76f   : > { %2444 = vmatprep.subr.bf16.mxu1 %v3382_v8  ;;  %2559 = vmatprep.subr.bf16.mxu0 %v2679_v51 }
 0x772   : > { %2445 = vmatpush3.bf16.msra.mxu1 %v3394_v24  ;;  %2560 = vmatpush3.bf16.msra.mxu0 %v3394_v24 }
 0x773   : > { %2572 = vmatprep.subr.msk.bf16.mxu1 %vm475_vm7, %v1897_v28  ;;  %2561 = vmatprep.subr.bf16.mxu0 %v2679_v51 }
 0x776   : > { %2447 = vmatpush3.bf16.msra.mxu1 %v1904_v32  ;;  %2562 = vmatpush3.bf16.msra.mxu0 %v1904_v32 }
 0x777   : > { %2563 = vmatprep.subr.bf16.mxu0 %v2679_v51 }
 0x779   : > { %2076 = vmatmul.mubr.bf16.vlgmr.msra.gmra.mrb[44].mxu1 %v2656_v1 }
 0x77a   : > { %2564 = vmatpush3.bf16.msra.mxu0 %v1913_v39 }
 0x77d   : > { %2566 = vmatmul.mubr.bf16.vlgmr.msra.gmra.mrb[56].mxu0 %v2659_v2 }
 0x82c   : > { %v2404_v42 = vpop.f32.mrb[40].mxu1 }
 0x82d   : > { %v2405_v11 = vpop.f32.mrb[41].mxu1 }
 0x82e   : > { %v2406_v63 = vadd.f32 %v2405_v11, %v2404_v42  ;;  %v2407_v10 = vpop.f32.mrb[42].mxu1 }
 0x82f   : > { %v2408_v6 = vpop.f32.mrb[43].mxu1 }
 0x830   : > { %v2409_v12 = vadd.f32 %v2408_v6, %v2407_v10  ;;  %v2426_v16 = vpop.f32.mrb[52].mxu0  ;;  %v1996_v52 = vadd.f32 %v2406_v63, %v1918_v17 }
 0x831   : > { %v2427_v18 = vpop.f32.mrb[53].mxu0 }
 0x832   : > { %v2428_v48 = vadd.f32 %v2427_v18, %v2426_v16  ;;  %v2429_v58 = vpop.f32.mrb[54].mxu0  ;;  %v1999_v13 = vadd.f32 %v2409_v12, %v1923_v60 }
 0x833   : > { %v2430_v40 = vpop.f32.mrb[55].mxu0 }
 0x834   : > { %v2037_v25 = vadd.f32 %v2428_v48, %v1996_v52  ;;  %v2431_v7 = vadd.f32 %v2430_v40, %v2429_v58 }
 0x836   : > { %v2040_v26 = vadd.f32 %v2431_v7, %v1999_v13 }
 0x84c   : > { %v2448_v49 = vpop.f32.mrb[44].mxu1 }
 0x84d   : > { %v2449_v8 = vpop.f32.mrb[45].mxu1 }
 0x84e   : > { %v2450_v41 = vadd.f32 %v2449_v8, %v2448_v49  ;;  %v2451_v45 = vpop.f32.mrb[46].mxu1 }
 0x84f   : > { %v2452_v24 = vpop.f32.mrb[47].mxu1 }
 0x850   : > { %v2453_v33 = vadd.f32 %v2452_v24, %v2451_v45  ;;  %v2078_v43 = vadd.f32 %v2450_v41, %v2037_v25  ;;  %v2118_v27 = vpop.f32.mrb[56].mxu0 }
 0x851   : > { %v2567_v31 = vpop.f32.mrb[57].mxu0 }
 0x852   : > { %v2119_v34 = vadd.f32 %v2118_v27, %v2078_v43  ;;  %v2081_v29 = vadd.f32 %v2453_v33, %v2040_v26  ;;  %v2121_v14 = vpop.f32.mrb[58].mxu0 }
 0x853   : > { %v2568_v59 = vpop.f32.mrb[59].mxu0 }
 0x854   : > { %2660 = vtanh.f32 %v2119_v34  ;;  %v2122_v19 = vadd.f32 %v2121_v14, %v2081_v29 }
 0x856   : > { %2662 = vtanh.f32 %v2122_v19 }
 0x85e   : > { %v2661_v0 = vpop.eup %2660 }
 0x85f   : > { %2128 = vst.msk [vmem:[%s440_s16] sm:$0xff] %vm2127_vm14, %v2661_v0 }
 0x860   : > { %v2663_v30 = vpop.eup %2662 }
 0x861   : > { %2129 = vst.msk [vmem:[%s440_s16 + $0x8] sm:$0xff] %vm2127_vm14, %v2663_v30 }
 0x862 PF: > { %s23_s25 = sadd.s32 1, %s2670_s25  }
 0x863   : > { %p20_p4 = scmp.ge.s32.totalorder %s23_s25, 4  }
 0x865   :  { %22 = sbr.rel (!%p20_p4) target bundleno = 1 (0x1), region = 102 }

</bundles_post_ra>
